<compile_context>
chip_gen: v5e
topology: v5e:2x2
jax: 0.10.0
libtpu: 0.0.40
codegen_flags: <defaults>
</compile_context>

<pallas_src>
import math

import jax
import jax.numpy as jnp
from jax.experimental import pallas as pl
from jax.experimental.pallas import tpu as pltpu

N_FFT = 512
HOP = 256
N_BINS = N_FFT // 2 + 1            # 257 one-sided frequency bins
BINS_PAD = 384                     # pad bins 257 -> 3*128 for lane density
FREQ = 16000
LN10 = math.log(10.0)
MAX_TILE_T = 512                   # frame rows per grid step (fits v7x 64 MiB VMEM)


def _specgram_kernel(frames_ref, dft_ref, out_ref):
    # frames: (TILE_T, N_FFT) bf16; dft: (N_FFT, 2*BINS_PAD) bf16 = [win*cos | -win*sin]
    y = jnp.dot(frames_ref[...], dft_ref[...], preferred_element_type=jnp.float32)
    re = y[:, :BINS_PAD]
    im = y[:, BINS_PAD:]
    mag2 = re * re + im * im
    # complex log10: real part = log10|z| = 0.5*ln(mag2)/ln10, imag part = arg(z)/ln10
    out_ref[0, :, :] = (0.5 / LN10) * jnp.log(mag2)
    out_ref[1, :, :] = (1.0 / LN10) * jnp.arctan2(im, re)


def _fused_dft_matrix():
    """(N_FFT, 2*BINS_PAD) bf16 matrix with the Hann window folded into the basis."""
    n = jnp.arange(N_FFT, dtype=jnp.float32)
    k = jnp.arange(N_BINS, dtype=jnp.float32)
    ang = 2.0 * jnp.pi * n[:, None] * k[None, :] / N_FFT          # (N_FFT, N_BINS)
    # torch.hann_window(N_FFT) is periodic: 0.5 * (1 - cos(2*pi*n/N))
    win = 0.5 * (1.0 - jnp.cos(2.0 * jnp.pi * n / N_FFT))
    dft = jnp.zeros((N_FFT, 2 * BINS_PAD), jnp.float32)
    dft = dft.at[:, :N_BINS].set(win[:, None] * jnp.cos(ang))
    dft = dft.at[:, BINS_PAD:BINS_PAD + N_BINS].set(-win[:, None] * jnp.sin(ang))
    return dft.astype(jnp.bfloat16)


def pipeline_forward(chunk, fs):
    """Mirrors PipeLine.forward: squeeze -> float -> STFT(512,256) -> complex log10 split."""
    x = jnp.asarray(chunk).squeeze().astype(jnp.float32)          # 1-D signal
    if fs != FREQ:
        # TODO(synk): torchaudio.functional.resample (polyphase sinc) not implemented.
        raise NotImplementedError("resampling path (fs != 16000) not implemented")

    L = x.shape[0]
    # center=True, pad_mode="reflect" (torchaudio Spectrogram defaults)
    padded = jnp.pad(x, N_FFT // 2, mode="reflect")
    n_frames = 1 + L // HOP
    # HOP == N_FFT/2, so frame t = [hop-block t, hop-block t+1]: two views, no gather.
    blocks = padded[: (n_frames + 1) * HOP].reshape(n_frames + 1, HOP)
    frames = jnp.concatenate([blocks[:-1], blocks[1:]], axis=-1)  # (T, N_FFT)

    # Pad the time axis to a multiple of the tile size (tile >= 8 rows).
    tile_t = min(MAX_TILE_T, ((n_frames + 7) // 8) * 8)
    t_pad = ((n_frames + tile_t - 1) // tile_t) * tile_t
    if t_pad != n_frames:
        frames = jnp.pad(frames, ((0, t_pad - n_frames), (0, 0)))
    frames = frames.astype(jnp.bfloat16)

    dft = _fused_dft_matrix()

    out = pl.pallas_call(
        _specgram_kernel,
        out_shape=jax.ShapeDtypeStruct((2, t_pad, BINS_PAD), jnp.float32),
        grid=(t_pad // tile_t,),
        in_specs=[
            pl.BlockSpec((tile_t, N_FFT), lambda i: (i, 0)),              # frame tiles
            pl.BlockSpec((N_FFT, 2 * BINS_PAD), lambda i: (0, 0)),        # resident DFT
        ],
        out_specs=pl.BlockSpec((2, tile_t, BINS_PAD), lambda i: (0, i, 0)),
        compiler_params=pltpu.CompilerParams(
            dimension_semantics=("parallel",)),                           # v7x: 2 TCs
    )(frames, dft)

    # (2, T_pad, bins_pad) -> (2, freq=257, time=T), matching
    # separate_complex(Spectrogram(x)).squeeze()
    return jnp.transpose(out[:, :n_frames, :N_BINS], (0, 2, 1))


if __name__ == "__main__":
    key = jax.random.PRNGKey(0)
    # small chunk: 3840 samples -> 16 STFT frames
    chunk = jax.random.normal(key, (1, 3840), dtype=jnp.float32)
    fs = 16000

    spec = pipeline_forward(chunk, fs)
    jax.block_until_ready(spec)
    assert spec.shape == (2, N_BINS, 1 + 3840 // HOP), spec.shape
    assert spec.dtype == jnp.float32
    print("KERNEL_OK")
</pallas_src>

<mosaic_0001>
module attributes {stable_mosaic.version = 11 : i64} {
  func.func @_specgram_kernel(%arg0: i32, %arg1: memref<16x512xbf16, #tpu.memory_space<vmem>>, %arg2: memref<512x768xbf16, #tpu.memory_space<vmem>>, %arg3: memref<2x16x384xf32, #tpu.memory_space<vmem>>) attributes {dimension_semantics = [#tpu.dimension_semantics<parallel>], iteration_bounds = array<i64: 1>, scalar_prefetch = 0 : i64, scratch_operands = 0 : i64, tpu.core_type = #tpu.core_type<tc>, window_params = [{transform_indices = @transform_0, window_bounds = array<i64: 16, 512>}, {pipeline_mode = #tpu.pipeline_mode<synchronous>, transform_indices = @transform_1, window_bounds = array<i64: 512, 768>}, {transform_indices = @transform_2, window_bounds = array<i64: 2, 16, 384>}]} {
    %c0 = arith.constant 0 : index
    %c0_0 = arith.constant 0 : index
    %0 = vector.load %arg1[%c0, %c0_0] : memref<16x512xbf16, #tpu.memory_space<vmem>>, vector<16x512xbf16>
    %c0_1 = arith.constant 0 : index
    %c0_2 = arith.constant 0 : index
    %1 = vector.load %arg2[%c0_1, %c0_2] : memref<512x768xbf16, #tpu.memory_space<vmem>>, vector<512x768xbf16>
    %cst = arith.constant dense<0.000000e+00> : vector<16x768xf32>
    %2 = tpu.matmul %0, %1, %cst {dimension_numbers = #tpu.dot_dimension_numbers<[1], [0], [0], [1], [0, 0, 1, 1], [], []>} : vector<16x512xbf16>, vector<512x768xbf16>, vector<16x768xf32> -> vector<16x768xf32>
    %3 = vector.extract_strided_slice %2 {offsets = [0, 0], sizes = [16, 384], strides = [1, 1]} : vector<16x768xf32> to vector<16x384xf32>
    %4 = vector.extract_strided_slice %2 {offsets = [0, 384], sizes = [16, 384], strides = [1, 1]} : vector<16x768xf32> to vector<16x384xf32>
    %5 = arith.mulf %3, %3 : vector<16x384xf32>
    %6 = arith.mulf %4, %4 : vector<16x384xf32>
    %7 = arith.addf %5, %6 : vector<16x384xf32>
    %8 = math.log %7 : vector<16x384xf32>
    %cst_3 = arith.constant 0.217147246 : f32
    %9 = vector.broadcast %cst_3 : f32 to vector<16x384xf32>
    %10 = arith.mulf %9, %8 : vector<16x384xf32>
    %c0_4 = arith.constant 0 : index
    %c0_5 = arith.constant 0 : index
    %c0_6 = arith.constant 0 : index
    %11 = vector.load %arg3[%c0_4, %c0_5, %c0_6] : memref<2x16x384xf32, #tpu.memory_space<vmem>>, vector<1x16x384xf32>
    %12 = vector.shape_cast %11 : vector<1x16x384xf32> to vector<16x384xf32>
    %13 = vector.shape_cast %10 : vector<16x384xf32> to vector<1x16x384xf32>
    tpu.vector_store %arg3[%c0_4, %c0_5, %c0_6], %13 {strides = array<i32>} : memref<2x16x384xf32, #tpu.memory_space<vmem>>, vector<1x16x384xf32>,
    %14 = math.atan2 %4, %3 : vector<16x384xf32>
    %cst_7 = arith.constant 0.434294492 : f32
    %15 = vector.broadcast %cst_7 : f32 to vector<16x384xf32>
    %16 = arith.mulf %15, %14 : vector<16x384xf32>
    %c1 = arith.constant 1 : index
    %c0_8 = arith.constant 0 : index
    %c0_9 = arith.constant 0 : index
    %17 = vector.load %arg3[%c1, %c0_8, %c0_9] : memref<2x16x384xf32, #tpu.memory_space<vmem>>, vector<1x16x384xf32>
    %18 = vector.shape_cast %17 : vector<1x16x384xf32> to vector<16x384xf32>
    %19 = vector.shape_cast %16 : vector<16x384xf32> to vector<1x16x384xf32>
    tpu.vector_store %arg3[%c1, %c0_8, %c0_9], %19 {strides = array<i32>} : memref<2x16x384xf32, #tpu.memory_space<vmem>>, vector<1x16x384xf32>,
    return
  }
  func.func @transform_0(%arg0: i32) -> (i32, i32) {
    %c0_i32 = arith.constant 0 : i32
    %c0_i32_0 = arith.constant 0 : i32
    return %arg0, %c0_i32 : i32, i32
  }
  func.func @transform_1(%arg0: i32) -> (i32, i32) {
    %c0_i32 = arith.constant 0 : i32
    %c0_i32_0 = arith.constant 0 : i32
    %c0_i32_1 = arith.constant 0 : i32
    return %c0_i32, %c0_i32_0 : i32, i32
  }
  func.func @transform_2(%arg0: i32) -> (i32, i32, i32) {
    %c0_i32 = arith.constant 0 : i32
    %c0_i32_0 = arith.constant 0 : i32
    %c0_i32_1 = arith.constant 0 : i32
    return %c0_i32, %arg0, %c0_i32_0 : i32, i32, i32
  }
}

</mosaic_0001>

<bundles_post_ra>
// kernel: tpu_custom_call.1
= control target key start
LH: loop header
LB: loop body
LE: loop exit
PB: predicated region body
PF: predicated region fallthrough
CT: control target
= control target key end

     0   :  { %7 = vsyncpa [#allocation3], 0  ;;  %s3598_s0 = inlined_call_operand.hbm [shape: bf16[16,512], index: 0, kind: input, shape index: {}]   ;;  %s3599_s1 = inlined_call_operand.hbm [shape: bf16[512,768], index: 1, kind: input, shape index: {}]   ;;  %s3600_s2 = inlined_call_operand.hbm [shape: f32[2,16,384], index: 2, kind: output, shape index: {}]  }
   0x1   :  { %8 = vsyncpa [#allocation6], 0 }
   0x2   :  { %9 = vsyncpa [#allocation4], 0  ;;  %s14_s11 = sshll.u32 %s3598_s0, 4  ;;  %s3082_s12 = smov [#allocation2]   ;;  %s15_s11 = int_to_ptr.hbm [resolvable:$true] %s14_s11 }
   0x3   :  { %s16_s13 = sshll.u32 %s3082_s12, 4  ;;  %s27_s16 = sshll.u32 %s3599_s1, 4  ;;  %s17_s13 = int_to_ptr.vmem [resolvable:$true] %s16_s13  ;;  %s28_s16 = int_to_ptr.hbm [resolvable:$true] %s27_s16 }
   0x4   :  { %s3083_s17 = smov 256   ;;  %s3084_s18 = smov 16  }
   0x5   :  { %22 = dma.hbm_to_vmem [thread:$0]  %s15_s11, 512, %s17_s13, [#allocation3], %s3083_s17, %s3083_s17, %s3084_s18  }
   0x6   :  { %s3085_s19 = smov [#allocation5]   ;;  %s3086_s21 = smov 384  }
   0x7   :  { %s29_s20 = sshll.u32 %s3085_s19, 4  ;;  %s3087_s22 = smov 24   ;;  %s30_s20 = int_to_ptr.vmem [resolvable:$true] %s29_s20 }
   0x8   :  { %35 = dma.hbm_to_vmem [thread:$0]  %s28_s16, 24576, %s30_s20, [#allocation6], %s3086_s21, %s3086_s21, %s3087_s22  }
   0x9   :  { %3076 = dma.done.wait [#allocation3], 512  }
   0xa   :  { %3077 = vsyncadd [#allocation3], 4294966784 }
   0xb   :  { %3078 = dma.done.wait [#allocation6], 24576  }
   0xc   :  { %3079 = vsyncadd [#allocation6], 4294942720  ;;  %v2177_v0 = vld [vmem:[#allocation5 + $0x150] sm:$0xf]  ;;  %v2824_v1 = vld [vmem:[#allocation5 + $0x164] sm:$0xf0] }
   0xd   :  { %v2369_v2 = vld [vmem:[#allocation5 + $0x2d0] sm:$0xf]  ;;  %v2178_v3 = vor.u32 %v2824_v1, %v2177_v0  ;;  %v2872_v4 = vld [vmem:[#allocation5 + $0x2e4] sm:$0xf0]  ;;  %v2153_v11 = vld [vmem:[#allocation5 + $0x120] sm:$0xf] }
   0xe   :  { %v2561_v5 = vld [vmem:[#allocation5 + $0x450] sm:$0xf]  ;;  %v2920_v6 = vld [vmem:[#allocation5 + $0x464] sm:$0xf0]  ;;  %v2370_v7 = vor.u32 %v2872_v4, %v2369_v2  ;;  %v2818_v13 = vld [vmem:[#allocation5 + $0x134] sm:$0xf0] }
   0xf   :  { %v2562_v8 = vor.u32 %v2920_v6, %v2561_v5  ;;  %v2753_v9 = vld [vmem:[#allocation5 + $0x5d0] sm:$0xf]  ;;  %v2968_v10 = vld [vmem:[#allocation5 + $0x5e4] sm:$0xf0]  ;;  %1220 = vmatpush.bf16.msra.mxu0 %v2178_v3  ;;  %v2345_v14 = vld [vmem:[#allocation5 + $0x2a0] sm:$0xf]  ;;  %v2154_v16 = vor.u32 %v2818_v13, %v2153_v11 }
  0x10   :  { %v2754_v12 = vor.u32 %v2968_v10, %v2753_v9  ;;  %v2866_v15 = vld [vmem:[#allocation5 + $0x2b4] sm:$0xf0]  ;;  %1234 = vmatpush.bf16.msra.mxu1 %v2370_v7  ;;  %v2537_v18 = vld [vmem:[#allocation5 + $0x420] sm:$0xf]  ;;  %v2129_v23 = vld [vmem:[#allocation5 + $0xf0] sm:$0xf] }
  0x11   :  { %1248 = vmatpush.bf16.msra.mxu2 %v2562_v8  ;;  %v2346_v17 = vor.u32 %v2866_v15, %v2345_v14  ;;  %v2914_v19 = vld [vmem:[#allocation5 + $0x434] sm:$0xf0]  ;;  %v2729_v20 = vld [vmem:[#allocation5 + $0x5a0] sm:$0xf]  ;;  %v2812_v24 = vld [vmem:[#allocation5 + $0x104] sm:$0xf0] }
  0x12   :  { %1262 = vmatpush.bf16.msra.mxu3 %v2754_v12  ;;  %v2538_v21 = vor.u32 %v2914_v19, %v2537_v18  ;;  %v2962_v22 = vld [vmem:[#allocation5 + $0x5b4] sm:$0xf0]  ;;  %v2321_v26 = vld [vmem:[#allocation5 + $0x270] sm:$0xf]  ;;  %v2860_v27 = vld [vmem:[#allocation5 + $0x284] sm:$0xf0]  ;;  %v2130_v29 = vor.u32 %v2812_v24, %v2129_v23 }
  0x13   :  { %v2730_v25 = vor.u32 %v2962_v22, %v2729_v20  ;;  %v2513_v28 = vld [vmem:[#allocation5 + $0x3f0] sm:$0xf]  ;;  %1221 = vmatpush.bf16.msra.mxu0 %v2154_v16  ;;  %v2908_v30 = vld [vmem:[#allocation5 + $0x404] sm:$0xf0]  ;;  %v2322_v33 = vor.u32 %v2860_v27, %v2321_v26  ;;  %v2105_v35 = vld [vmem:[#allocation5 + $0xc0] sm:$0xf] }
  0x14   :  { %v2705_v31 = vld [vmem:[#allocation5 + $0x570] sm:$0xf]  ;;  %v2956_v32 = vld [vmem:[#allocation5 + $0x584] sm:$0xf0]  ;;  %1235 = vmatpush.bf16.msra.mxu1 %v2346_v17  ;;  %v2514_v34 = vor.u32 %v2908_v30, %v2513_v28  ;;  %v2806_v36 = vld [vmem:[#allocation5 + $0xd4] sm:$0xf0] }
  0x15   :  { %1249 = vmatpush.bf16.msra.mxu2 %v2538_v21  ;;  %v2297_v37 = vld [vmem:[#allocation5 + $0x240] sm:$0xf]  ;;  %v2706_v38 = vor.u32 %v2956_v32, %v2705_v31  ;;  %v2854_v39 = vld [vmem:[#allocation5 + $0x254] sm:$0xf0]  ;;  %v2106_v44 = vor.u32 %v2806_v36, %v2105_v35  ;;  %v2081_v47 = vld [vmem:[#allocation5 + $0x90] sm:$0xf] }
  0x16   :  { %1263 = vmatpush.bf16.msra.mxu3 %v2730_v25  ;;  %v2489_v40 = vld [vmem:[#allocation5 + $0x3c0] sm:$0xf]  ;;  %v2902_v41 = vld [vmem:[#allocation5 + $0x3d4] sm:$0xf0]  ;;  %v2298_v45 = vor.u32 %v2854_v39, %v2297_v37  ;;  %v2800_v48 = vld [vmem:[#allocation5 + $0xa4] sm:$0xf0] }
  0x17   :  { %v2681_v42 = vld [vmem:[#allocation5 + $0x540] sm:$0xf]  ;;  %v2950_v43 = vld [vmem:[#allocation5 + $0x554] sm:$0xf0]  ;;  %1222 = vmatpush.bf16.msra.mxu0 %v2130_v29  ;;  %v2490_v46 = vor.u32 %v2902_v41, %v2489_v40  ;;  %v2273_v49 = vld [vmem:[#allocation5 + $0x210] sm:$0xf]  ;;  %v2082_v56 = vor.u32 %v2800_v48, %v2081_v47 }
  0x18   :  { %1236 = vmatpush.bf16.msra.mxu1 %v2322_v33  ;;  %v2682_v50 = vor.u32 %v2950_v43, %v2681_v42  ;;  %v2848_v51 = vld [vmem:[#allocation5 + $0x224] sm:$0xf0]  ;;  %v2465_v52 = vld [vmem:[#allocation5 + $0x390] sm:$0xf]  ;;  %v2057_v59 = vld [vmem:[#allocation5 + $0x60] sm:$0xf] }
  0x19   :  { %1250 = vmatpush.bf16.msra.mxu2 %v2514_v34  ;;  %v2896_v53 = vld [vmem:[#allocation5 + $0x3a4] sm:$0xf0]  ;;  %v2657_v54 = vld [vmem:[#allocation5 + $0x510] sm:$0xf]  ;;  %v2274_v57 = vor.u32 %v2848_v51, %v2273_v49  ;;  %v2794_v60 = vld [vmem:[#allocation5 + $0x74] sm:$0xf0] }
  0x1a   :  { %1264 = vmatpush.bf16.msra.mxu3 %v2706_v38  ;;  %v2944_v55 = vld [vmem:[#allocation5 + $0x524] sm:$0xf0]  ;;  %v2466_v58 = vor.u32 %v2896_v53, %v2465_v52  ;;  %v2249_v61 = vld [vmem:[#allocation5 + $0x1e0] sm:$0xf]  ;;  %v2842_v63 = vld [vmem:[#allocation5 + $0x1f4] sm:$0xf0]  ;;  %v2058_v4 = vor.u32 %v2794_v60, %v2057_v59 }
  0x1b   :  { %1223 = vmatpush.bf16.msra.mxu0 %v2106_v44  ;;  %v2658_v62 = vor.u32 %v2944_v55, %v2657_v54  ;;  %v2441_v0 = vld [vmem:[#allocation5 + $0x360] sm:$0xf]  ;;  %v2890_v1 = vld [vmem:[#allocation5 + $0x374] sm:$0xf0]  ;;  %v2250_v5 = vor.u32 %v2842_v63, %v2249_v61  ;;  %v2033_v7 = vld [vmem:[#allocation5 + $0x30] sm:$0xf] }
  0x1c   :  { %1237 = vmatpush.bf16.msra.mxu1 %v2298_v45  ;;  %v2633_v2 = vld [vmem:[#allocation5 + $0x4e0] sm:$0xf]  ;;  %v2938_v3 = vld [vmem:[#allocation5 + $0x4f4] sm:$0xf0]  ;;  %v2442_v6 = vor.u32 %v2890_v1, %v2441_v0  ;;  %v2788_v8 = vld [vmem:[#allocation5 + $0x44] sm:$0xf0] }
  0x1d   :  { %1251 = vmatpush.bf16.msra.mxu2 %v2490_v46  ;;  %v2225_v9 = vld [vmem:[#allocation5 + $0x1b0] sm:$0xf]  ;;  %v2634_v10 = vor.u32 %v2938_v3, %v2633_v2  ;;  %v2836_v11 = vld [vmem:[#allocation5 + $0x1c4] sm:$0xf0]  ;;  %v2034_v16 = vor.u32 %v2788_v8, %v2033_v7  ;;  %v2009_v17 = vld [vmem:[#allocation5] sm:$0xf] }
  0x1e   :  { %1265 = vmatpush.bf16.msra.mxu3 %v2682_v50  ;;  %v2417_v12 = vld [vmem:[#allocation5 + $0x330] sm:$0xf]  ;;  %v2884_v13 = vld [vmem:[#allocation5 + $0x344] sm:$0xf0]  ;;  %v2782_v18 = vld [vmem:[#allocation5 + $0x14] sm:$0xf0]  ;;  %v2226_v19 = vor.u32 %v2836_v11, %v2225_v9 }
  0x1f   :  { %1224 = vmatpush.bf16.msra.mxu0 %v2082_v56  ;;  %v2609_v14 = vld [vmem:[#allocation5 + $0x4b0] sm:$0xf]  ;;  %v2932_v15 = vld [vmem:[#allocation5 + $0x4c4] sm:$0xf0]  ;;  %v2418_v20 = vor.u32 %v2884_v13, %v2417_v12  ;;  %v2201_v21 = vld [vmem:[#allocation5 + $0x180] sm:$0xf]  ;;  %v2010_v31 = vor.u32 %v2782_v18, %v2009_v17 }
  0x20   :  { %1238 = vmatpush.bf16.msra.mxu1 %v2274_v57  ;;  %v2830_v22 = vld [vmem:[#allocation5 + $0x194] sm:$0xf0]  ;;  %v2393_v23 = vld [vmem:[#allocation5 + $0x300] sm:$0xf]  ;;  %v2610_v24 = vor.u32 %v2932_v15, %v2609_v14  ;;  %v2821_v28 = vld [vmem:[#allocation5 + $0x154] sm:$0xf] }
  0x21   :  { %1252 = vmatpush.bf16.msra.mxu2 %v2466_v58  ;;  %v2878_v25 = vld [vmem:[#allocation5 + $0x314] sm:$0xf0]  ;;  %v2585_v26 = vld [vmem:[#allocation5 + $0x480] sm:$0xf]  ;;  %v2179_v29 = vld [vmem:[#allocation5 + $0x168] sm:$0xf0]  ;;  %v2202_v35 = vor.u32 %v2830_v22, %v2201_v21 }
  0x22   :  { %1266 = vmatpush.bf16.msra.mxu3 %v2658_v62  ;;  %v2926_v27 = vld [vmem:[#allocation5 + $0x494] sm:$0xf0]  ;;  %v2869_v30 = vld [vmem:[#allocation5 + $0x2d4] sm:$0xf]  ;;  %v2371_v32 = vld [vmem:[#allocation5 + $0x2e8] sm:$0xf0]  ;;  %v2394_v36 = vor.u32 %v2878_v25, %v2393_v23  ;;  %v2182_v40 = vor.u32 %v2821_v28, %v2179_v29 }
  0x23   :  { %1225 = vmatpush.bf16.msra.mxu0 %v2058_v4  ;;  %v2917_v33 = vld [vmem:[#allocation5 + $0x454] sm:$0xf]  ;;  %v2563_v34 = vld [vmem:[#allocation5 + $0x468] sm:$0xf0]  ;;  %v2586_v39 = vor.u32 %v2926_v27, %v2585_v26  ;;  %v2374_v41 = vor.u32 %v2869_v30, %v2371_v32  ;;  %v2815_v43 = vld [vmem:[#allocation5 + $0x124] sm:$0xf] }
  0x24   :  { %1239 = vmatpush.bf16.msra.mxu1 %v2250_v5  ;;  %v2965_v37 = vld [vmem:[#allocation5 + $0x5d4] sm:$0xf]  ;;  %v2755_v38 = vld [vmem:[#allocation5 + $0x5e8] sm:$0xf0]  ;;  %v2566_v42 = vor.u32 %v2917_v33, %v2563_v34  ;;  %v2155_v44 = vld [vmem:[#allocation5 + $0x138] sm:$0xf0] }
  0x25   :  { %1253 = vmatpush.bf16.msra.mxu2 %v2442_v6  ;;  %v2863_v45 = vld [vmem:[#allocation5 + $0x2a4] sm:$0xf]  ;;  %v2758_v46 = vor.u32 %v2965_v37, %v2755_v38  ;;  %v2347_v47 = vld [vmem:[#allocation5 + $0x2b8] sm:$0xf0]  ;;  %v2158_v52 = vor.u32 %v2815_v43, %v2155_v44  ;;  %v2809_v55 = vld [vmem:[#allocation5 + $0xf4] sm:$0xf] }
  0x26   :  { %1267 = vmatpush.bf16.msra.mxu3 %v2634_v10  ;;  %v2911_v48 = vld [vmem:[#allocation5 + $0x424] sm:$0xf]  ;;  %v2539_v49 = vld [vmem:[#allocation5 + $0x438] sm:$0xf0]  ;;  %v2350_v53 = vor.u32 %v2863_v45, %v2347_v47  ;;  %v2131_v56 = vld [vmem:[#allocation5 + $0x108] sm:$0xf0] }
  0x27   :  { %1226 = vmatpush.bf16.msra.mxu0 %v2034_v16  ;;  %v2959_v50 = vld [vmem:[#allocation5 + $0x5a4] sm:$0xf]  ;;  %v2731_v51 = vld [vmem:[#allocation5 + $0x5b8] sm:$0xf0]  ;;  %v2542_v54 = vor.u32 %v2911_v48, %v2539_v49  ;;  %v2857_v57 = vld [vmem:[#allocation5 + $0x274] sm:$0xf]  ;;  %v2134_v1 = vor.u32 %v2809_v55, %v2131_v56 }
  0x28   :  { %1240 = vmatpush.bf16.msra.mxu1 %v2226_v19  ;;  %v2734_v58 = vor.u32 %v2959_v50, %v2731_v51  ;;  %v2323_v59 = vld [vmem:[#allocation5 + $0x288] sm:$0xf0]  ;;  %v2905_v60 = vld [vmem:[#allocation5 + $0x3f4] sm:$0xf]  ;;  %v2803_v0 = vld [vmem:[#allocation5 + $0xc4] sm:$0xf] }
  0x29   :  { %1254 = vmatpush.bf16.msra.mxu2 %v2418_v20  ;;  %v2515_v61 = vld [vmem:[#allocation5 + $0x408] sm:$0xf0]  ;;  %v2953_v62 = vld [vmem:[#allocation5 + $0x574] sm:$0xf]  ;;  %v2107_v2 = vld [vmem:[#allocation5 + $0xd8] sm:$0xf0]  ;;  %v2326_v5 = vor.u32 %v2857_v57, %v2323_v59 }
  0x2a   :  { %1268 = vmatpush.bf16.msra.mxu3 %v2610_v24  ;;  %v2707_v63 = vld [vmem:[#allocation5 + $0x588] sm:$0xf0]  ;;  %v2001_v3 = vld [vmem:[#allocation2 + $0x8] sm:$0xf]  ;;  %v2778_v4 = vld [vmem:[#allocation2 + $0x14] sm:$0xf0]  ;;  %v2518_v6 = vor.u32 %v2905_v60, %v2515_v61  ;;  %v2110_v19 = vor.u32 %v2803_v0, %v2107_v2 }
  0x2b   :  { %1227 = vmatpush.bf16.msra.mxu0 %v2010_v31  ;;  %v2851_v7 = vld [vmem:[#allocation5 + $0x244] sm:$0xf]  ;;  %v3115_v8 = vor.u32 %v2778_v4, %v2001_v3  ;;  %v2776_v9 = vld [vmem:[#allocation2 + $0xc] sm:$0xf]  ;;  %v2003_v10 = vld [vmem:[#allocation2 + $0x18] sm:$0xf0]  ;;  %v2710_v11 = vor.u32 %v2953_v62, %v2707_v63 }
  0x2c   :  { %1241 = vmatpush.bf16.msra.mxu1 %v2202_v35  ;;  %v2299_v12 = vld [vmem:[#allocation5 + $0x258] sm:$0xf0]  ;;  %v2899_v13 = vld [vmem:[#allocation5 + $0x3c4] sm:$0xf]  ;;  %v3117_v15 = vor.u32 %v2776_v9, %v2003_v10  ;;  %v2797_v18 = vld [vmem:[#allocation5 + $0x94] sm:$0xf] }
  0x2d   :  { %1255 = vmatpush.bf16.msra.mxu2 %v2394_v36  ;;  %v2491_v14 = vld [vmem:[#allocation5 + $0x3d8] sm:$0xf0]  ;;  %v2947_v16 = vld [vmem:[#allocation5 + $0x544] sm:$0xf]  ;;  %v2083_v20 = vld [vmem:[#allocation5 + $0xa8] sm:$0xf0]  ;;  %v2302_v23 = vor.u32 %v2851_v7, %v2299_v12 }
  0x2e   :  { %1269 = vmatpush.bf16.msra.mxu3 %v2586_v39  ;;  %v2683_v17 = vld [vmem:[#allocation5 + $0x558] sm:$0xf0]  ;;  %v1993_v21 = vld [vmem:[#allocation2] sm:$0xf]  ;;  %v2777_v22 = vld [vmem:[#allocation2 + $0xc] sm:$0xf0]  ;;  %v2494_v24 = vor.u32 %v2899_v13, %v2491_v14  ;;  %v2086_v36 = vor.u32 %v2797_v18, %v2083_v20 }
  0x2f   :  { %1276 = vmatpush.bf16.msrb.mxu0 %v2182_v40  ;;  %v2845_v25 = vld [vmem:[#allocation5 + $0x214] sm:$0xf]  ;;  %v3121_v26 = vor.u32 %v2777_v22, %v1993_v21  ;;  %v2775_v27 = vld [vmem:[#allocation2 + $0x4] sm:$0xf]  ;;  %v2686_v29 = vor.u32 %v2947_v16, %v2683_v17  ;;  %v2275_v30 = vld [vmem:[#allocation5 + $0x228] sm:$0xf0] }
  0x30   :  { %1290 = vmatpush.bf16.msrb.mxu1 %v2374_v41  ;;  %1256 = vmatmul.bf16.vlgmr.msra.gmra.mxu2 %v3115_v8  ;;  %v1995_v28 = vld [vmem:[#allocation2 + $0x10] sm:$0xf0]  ;;  %v2467_v32 = vld [vmem:[#allocation5 + $0x3a8] sm:$0xf0]  ;;  %v2278_v37 = vor.u32 %v2845_v25, %v2275_v30  ;;  %v2791_v39 = vld [vmem:[#allocation5 + $0x64] sm:$0xf] }
  0x31   :  { %1304 = vmatpush.bf16.msrb.mxu2 %v2566_v42  ;;  %1270 = vmatmul.bf16.vlgmr.msra.gmra.mxu3 %v3117_v15  ;;  %v2893_v31 = vld [vmem:[#allocation5 + $0x394] sm:$0xf]  ;;  %v3123_v33 = vor.u32 %v2775_v27, %v1995_v28  ;;  %v2659_v35 = vld [vmem:[#allocation5 + $0x528] sm:$0xf0]  ;;  %v2059_v40 = vld [vmem:[#allocation5 + $0x78] sm:$0xf0] }
  0x32   :  { %1318 = vmatpush.bf16.msrb.mxu3 %v2758_v46  ;;  %v2941_v34 = vld [vmem:[#allocation5 + $0x514] sm:$0xf]  ;;  %1228 = vmatmul.bf16.vlgmr.msra.gmra.mxu0 %v3121_v26  ;;  %v2470_v38 = vor.u32 %v2893_v31, %v2467_v32  ;;  %v2839_v41 = vld [vmem:[#allocation5 + $0x1e4] sm:$0xf]  ;;  %v2251_v43 = vld [vmem:[#allocation5 + $0x1f8] sm:$0xf0]  ;;  %v2062_v48 = vor.u32 %v2791_v39, %v2059_v40 }
  0x33   :  { %1277 = vmatpush.bf16.msrb.mxu0 %v2158_v52  ;;  %1242 = vmatmul.bf16.vlgmr.msra.gmra.mxu1 %v3123_v33  ;;  %v2662_v42 = vor.u32 %v2941_v34, %v2659_v35  ;;  %v2887_v44 = vld [vmem:[#allocation5 + $0x364] sm:$0xf]  ;;  %v2443_v45 = vld [vmem:[#allocation5 + $0x378] sm:$0xf0]  ;;  %v2254_v49 = vor.u32 %v2839_v41, %v2251_v43  ;;  %v2785_v51 = vld [vmem:[#allocation5 + $0x34] sm:$0xf] }
  0x34   :  { %1291 = vmatpush.bf16.msrb.mxu1 %v2350_v53  ;;  %v2935_v46 = vld [vmem:[#allocation5 + $0x4e4] sm:$0xf]  ;;  %v2635_v47 = vld [vmem:[#allocation5 + $0x4f8] sm:$0xf0]  ;;  %v2446_v50 = vor.u32 %v2887_v44, %v2443_v45  ;;  %v2035_v52 = vld [vmem:[#allocation5 + $0x48] sm:$0xf0] }
  0x35   :  { %1305 = vmatpush.bf16.msrb.mxu2 %v2542_v54  ;;  %v2833_v53 = vld [vmem:[#allocation5 + $0x1b4] sm:$0xf]  ;;  %v2638_v54 = vor.u32 %v2935_v46, %v2635_v47  ;;  %v2227_v55 = vld [vmem:[#allocation5 + $0x1c8] sm:$0xf0]  ;;  %v2038_v60 = vor.u32 %v2785_v51, %v2035_v52  ;;  %v2779_v61 = vld [vmem:[#allocation5 + $0x4] sm:$0xf] }
  0x36   :  { %1319 = vmatpush.bf16.msrb.mxu3 %v2734_v58  ;;  %v2881_v56 = vld [vmem:[#allocation5 + $0x334] sm:$0xf]  ;;  %v2419_v57 = vld [vmem:[#allocation5 + $0x348] sm:$0xf0]  ;;  %v2011_v62 = vld [vmem:[#allocation5 + $0x18] sm:$0xf0]  ;;  %v2230_v63 = vor.u32 %v2833_v53, %v2227_v55 }
  0x37   :  { %1278 = vmatpush.bf16.msrb.mxu0 %v2134_v1  ;;  %v2929_v58 = vld [vmem:[#allocation5 + $0x4b4] sm:$0xf]  ;;  %v2611_v59 = vld [vmem:[#allocation5 + $0x4c8] sm:$0xf0]  ;;  %v2422_v0 = vor.u32 %v2881_v56, %v2419_v57  ;;  %v2827_v1 = vld [vmem:[#allocation5 + $0x184] sm:$0xf]  ;;  %v2014_v12 = vor.u32 %v2779_v61, %v2011_v62 }
  0x38   :  { %1292 = vmatpush.bf16.msrb.mxu1 %v2326_v5  ;;  %v2203_v2 = vld [vmem:[#allocation5 + $0x198] sm:$0xf0]  ;;  %v2875_v3 = vld [vmem:[#allocation5 + $0x304] sm:$0xf]  ;;  %v2614_v4 = vor.u32 %v2929_v58, %v2611_v59  ;;  %v2185_v9 = vld [vmem:[#allocation5 + $0x158] sm:$0xf] }
  0x39   :  { %1306 = vmatpush.bf16.msrb.mxu2 %v2518_v6  ;;  %v2395_v5 = vld [vmem:[#allocation5 + $0x318] sm:$0xf0]  ;;  %v2923_v6 = vld [vmem:[#allocation5 + $0x484] sm:$0xf]  ;;  %v2825_v10 = vld [vmem:[#allocation5 + $0x16c] sm:$0xf0]  ;;  %v2206_v17 = vor.u32 %v2827_v1, %v2203_v2 }
  0x3a   :  { %1320 = vmatpush.bf16.msrb.mxu3 %v2710_v11  ;;  %v2587_v7 = vld [vmem:[#allocation5 + $0x498] sm:$0xf0]  ;;  %v2377_v11 = vld [vmem:[#allocation5 + $0x2d8] sm:$0xf]  ;;  %v2873_v13 = vld [vmem:[#allocation5 + $0x2ec] sm:$0xf0]  ;;  %v2398_v18 = vor.u32 %v2875_v3, %v2395_v5  ;;  %v2186_v22 = vor.u32 %v2825_v10, %v2185_v9 }
  0x3b   :  { %1279 = vmatpush.bf16.msrb.mxu0 %v2110_v19  ;;  %v2569_v14 = vld [vmem:[#allocation5 + $0x458] sm:$0xf]  ;;  %v2921_v16 = vld [vmem:[#allocation5 + $0x46c] sm:$0xf0]  ;;  %v2590_v21 = vor.u32 %v2923_v6, %v2587_v7  ;;  %v2161_v25 = vld [vmem:[#allocation5 + $0x128] sm:$0xf] }
  0x3c   :  { %1293 = vmatpush.bf16.msrb.mxu1 %v2302_v23  ;;  %v2761_v19 = vld [vmem:[#allocation5 + $0x5d8] sm:$0xf]  ;;  %v2969_v20 = vld [vmem:[#allocation5 + $0x5ec] sm:$0xf0]  ;;  %v2378_v23 = vor.u32 %v2873_v13, %v2377_v11  ;;  %v2819_v27 = vld [vmem:[#allocation5 + $0x13c] sm:$0xf0] }
  0x3d   :  { %1307 = vmatpush.bf16.msrb.mxu2 %v2494_v24  ;;  %v2570_v24 = vor.u32 %v2921_v16, %v2569_v14  ;;  %v2353_v28 = vld [vmem:[#allocation5 + $0x2a8] sm:$0xf]  ;;  %v2867_v30 = vld [vmem:[#allocation5 + $0x2bc] sm:$0xf0]  ;;  %v2137_v39 = vld [vmem:[#allocation5 + $0xf8] sm:$0xf] }
  0x3e   :  { %1321 = vmatpush.bf16.msrb.mxu3 %v2686_v29  ;;  %v2762_v29 = vor.u32 %v2969_v20, %v2761_v19  ;;  %v2545_v31 = vld [vmem:[#allocation5 + $0x428] sm:$0xf]  ;;  %v2915_v32 = vld [vmem:[#allocation5 + $0x43c] sm:$0xf0]  ;;  %v2813_v40 = vld [vmem:[#allocation5 + $0x10c] sm:$0xf0] }
  0x3f   :  { %1280 = vmatpush.bf16.msrb.mxu0 %v2086_v36  ;;  %v2737_v34 = vld [vmem:[#allocation5 + $0x5a8] sm:$0xf]  ;;  %v2963_v35 = vld [vmem:[#allocation5 + $0x5bc] sm:$0xf0]  ;;  %v2162_v36 = vor.u32 %v2819_v27, %v2161_v25  ;;  %v2329_v41 = vld [vmem:[#allocation5 + $0x278] sm:$0xf] }
  0x40   :  { %1294 = vmatpush.bf16.msrb.mxu1 %v2278_v37  ;;  %v2354_v37 = vor.u32 %v2867_v30, %v2353_v28  ;;  %v2861_v43 = vld [vmem:[#allocation5 + $0x28c] sm:$0xf0]  ;;  %v2521_v44 = vld [vmem:[#allocation5 + $0x3f8] sm:$0xf]  ;;  %v2113_v51 = vld [vmem:[#allocation5 + $0xc8] sm:$0xf] }
  0x41   :  { %1308 = vmatpush.bf16.msrb.mxu2 %v2470_v38  ;;  %v2546_v38 = vor.u32 %v2915_v32, %v2545_v31  ;;  %v2909_v45 = vld [vmem:[#allocation5 + $0x40c] sm:$0xf0]  ;;  %v2713_v46 = vld [vmem:[#allocation5 + $0x578] sm:$0xf]  ;;  %v2807_v52 = vld [vmem:[#allocation5 + $0xdc] sm:$0xf0] }
  0x42   :  { %1322 = vmatpush.bf16.msrb.mxu3 %v2662_v42  ;;  %v2738_v42 = vor.u32 %v2963_v35, %v2737_v34  ;;  %v2957_v47 = vld [vmem:[#allocation5 + $0x58c] sm:$0xf0]  ;;  %v2305_v53 = vld [vmem:[#allocation5 + $0x248] sm:$0xf]  ;;  %v2855_v55 = vld [vmem:[#allocation5 + $0x25c] sm:$0xf0] }
  0x43   :  { %1281 = vmatpush.bf16.msrb.mxu0 %v2062_v48  ;;  %v2138_v48 = vor.u32 %v2813_v40, %v2137_v39  ;;  %v2497_v56 = vld [vmem:[#allocation5 + $0x3c8] sm:$0xf]  ;;  %v2903_v57 = vld [vmem:[#allocation5 + $0x3dc] sm:$0xf0]  ;;  %v2306_v61 = vor.u32 %v2855_v55, %v2305_v53  ;;  %v2281_v1 = vld [vmem:[#allocation5 + $0x218] sm:$0xf] }
  0x44   :  { %1295 = vmatpush.bf16.msrb.mxu1 %v2254_v49  ;;  %v2330_v49 = vor.u32 %v2861_v43, %v2329_v41  ;;  %v2689_v58 = vld [vmem:[#allocation5 + $0x548] sm:$0xf]  ;;  %v2951_v59 = vld [vmem:[#allocation5 + $0x55c] sm:$0xf0]  ;;  %v2498_v62 = vor.u32 %v2903_v57, %v2497_v56  ;;  %v2849_v3 = vld [vmem:[#allocation5 + $0x22c] sm:$0xf0] }
  0x45   :  { %1309 = vmatpush.bf16.msrb.mxu2 %v2446_v50  ;;  %v2522_v50 = vor.u32 %v2909_v45, %v2521_v44  ;;  %v2690_v2 = vor.u32 %v2951_v59, %v2689_v58  ;;  %v2897_v5 = vld [vmem:[#allocation5 + $0x3ac] sm:$0xf0]  ;;  %v2665_v6 = vld [vmem:[#allocation5 + $0x518] sm:$0xf]  ;;  %v2282_v10 = vor.u32 %v2849_v3, %v2281_v1  ;;  %v2795_v13 = vld [vmem:[#allocation5 + $0x7c] sm:$0xf0] }
  0x46   :  { %1323 = vmatpush.bf16.msrb.mxu3 %v2638_v54  ;;  %v2714_v54 = vor.u32 %v2957_v47, %v2713_v46  ;;  %v2945_v7 = vld [vmem:[#allocation5 + $0x52c] sm:$0xf0]  ;;  %v2257_v14 = vld [vmem:[#allocation5 + $0x1e8] sm:$0xf]  ;;  %v2891_v19 = vld [vmem:[#allocation5 + $0x37c] sm:$0xf0] }
  0x47   :  { %1282 = vmatpush.bf16.msrb.mxu0 %v2038_v60  ;;  %v2114_v60 = vor.u32 %v2807_v52, %v2113_v51  ;;  %v2666_v16 = vor.u32 %v2945_v7, %v2665_v6  ;;  %v2641_v20 = vld [vmem:[#allocation5 + $0x4e8] sm:$0xf]  ;;  %v2041_v25 = vld [vmem:[#allocation5 + $0x38] sm:$0xf]  ;;  %v2789_v27 = vld [vmem:[#allocation5 + $0x4c] sm:$0xf0] }
  0x48   :  { %1296 = vmatpush.bf16.msrb.mxu1 %v2230_v63  ;;  %v2089_v63 = vld [vmem:[#allocation5 + $0x98] sm:$0xf]  ;;  %v2837_v30 = vld [vmem:[#allocation5 + $0x1cc] sm:$0xf0]  ;;  %v2209_v41 = vld [vmem:[#allocation5 + $0x188] sm:$0xf] }
  0x49   :  { %1310 = vmatpush.bf16.msrb.mxu2 %v2422_v0  ;;  %v2801_v0 = vld [vmem:[#allocation5 + $0xac] sm:$0xf0]  ;;  %v2233_v28 = vld [vmem:[#allocation5 + $0x1b8] sm:$0xf]  ;;  %v2401_v43 = vld [vmem:[#allocation5 + $0x308] sm:$0xf] }
  0x4a   :  { %1324 = vmatpush.bf16.msrb.mxu3 %v2614_v4  ;;  %v2473_v4 = vld [vmem:[#allocation5 + $0x398] sm:$0xf]  ;;  %v2090_v9 = vor.u32 %v2801_v0, %v2089_v63  ;;  %v2885_v32 = vld [vmem:[#allocation5 + $0x34c] sm:$0xf0]  ;;  %v2234_v39 = vor.u32 %v2837_v30, %v2233_v28  ;;  %v2879_v45 = vld [vmem:[#allocation5 + $0x31c] sm:$0xf0] }
  0x4b   :  { %1283 = vmatpush.bf16.msrb.mxu0 %v2014_v12  ;;  %v2474_v11 = vor.u32 %v2897_v5, %v2473_v4  ;;  %v2065_v12 = vld [vmem:[#allocation5 + $0x68] sm:$0xf]  ;;  %v2425_v31 = vld [vmem:[#allocation5 + $0x338] sm:$0xf]  ;;  %v2933_v35 = vld [vmem:[#allocation5 + $0x4cc] sm:$0xf0]  ;;  %v2402_v56 = vor.u32 %v2879_v45, %v2401_v43 }
  0x4c   :  { %1297 = vmatpush.bf16.msrb.mxu1 %v2206_v17  ;;  %v2843_v17 = vld [vmem:[#allocation5 + $0x1fc] sm:$0xf0]  ;;  %v2617_v34 = vld [vmem:[#allocation5 + $0x4b8] sm:$0xf]  ;;  %v2426_v40 = vor.u32 %v2885_v32, %v2425_v31  ;;  %v2593_v46 = vld [vmem:[#allocation5 + $0x488] sm:$0xf] }
  0x4d   :  { %1311 = vmatpush.bf16.msrb.mxu2 %v2398_v18  ;;  %v2449_v18 = vld [vmem:[#allocation5 + $0x368] sm:$0xf]  ;;  %v2618_v44 = vor.u32 %v2933_v35, %v2617_v34  ;;  %v2927_v47 = vld [vmem:[#allocation5 + $0x49c] sm:$0xf0]  ;;  %v2379_v52 = vld [vmem:[#allocation5 + $0x2f0] sm:$0xf0] }
  0x4e   :  { %1325 = vmatpush.bf16.msrb.mxu3 %v2590_v21  ;;  %1284 = vmatmul.bf16.vlgmr.msrb.gmra.mxu0 %v3121_v26  ;;  %v2939_v21 = vld [vmem:[#allocation5 + $0x4fc] sm:$0xf0]  ;;  %v2918_v53 = vld [vmem:[#allocation5 + $0x45c] sm:$0xf]  ;;  %v2763_v58 = vld [vmem:[#allocation5 + $0x5f0] sm:$0xf0]  ;;  %v2594_v59 = vor.u32 %v2927_v47, %v2593_v46 }
  0x4f   :  { %1332 = vmatpush.bf16.msra.mxu0 %v2186_v22  ;;  %1298 = vmatmul.bf16.vlgmr.msrb.gmra.mxu1 %v3123_v33  ;;  %v2066_v22 = vor.u32 %v2795_v13, %v2065_v12  ;;  %v2966_v57 = vld [vmem:[#allocation5 + $0x5dc] sm:$0xf]  ;;  %v2816_v63 = vld [vmem:[#allocation5 + $0x12c] sm:$0xf]  ;;  %v2163_v0 = vld [vmem:[#allocation5 + $0x140] sm:$0xf0] }
  0x50   :  { %1346 = vmatpush.bf16.msra.mxu1 %v2378_v23  ;;  %1312 = vmatmul.bf16.vlgmr.msrb.gmra.mxu2 %v3115_v8  ;;  %v2258_v23 = vor.u32 %v2843_v17, %v2257_v14  ;;  %v2864_v1 = vld [vmem:[#allocation5 + $0x2ac] sm:$0xf]  ;;  %v2355_v3 = vld [vmem:[#allocation5 + $0x2c0] sm:$0xf0]  ;;  %v2810_v12 = vld [vmem:[#allocation5 + $0xfc] sm:$0xf] }
  0x51   :  { %1360 = vmatpush.bf16.msra.mxu2 %v2570_v24  ;;  %1326 = vmatmul.bf16.vlgmr.msrb.gmra.mxu3 %v3117_v15  ;;  %v2450_v24 = vor.u32 %v2891_v19, %v2449_v18  ;;  %v2912_v4 = vld [vmem:[#allocation5 + $0x42c] sm:$0xf]  ;;  %v2547_v5 = vld [vmem:[#allocation5 + $0x440] sm:$0xf0]  ;;  %v2139_v13 = vld [vmem:[#allocation5 + $0x110] sm:$0xf0] }
  0x52   :  { %1374 = vmatpush.bf16.msra.mxu3 %v2762_v29  ;;  %v2642_v29 = vor.u32 %v2939_v21, %v2641_v20  ;;  %v2960_v6 = vld [vmem:[#allocation5 + $0x5ac] sm:$0xf]  ;;  %v2739_v7 = vld [vmem:[#allocation5 + $0x5c0] sm:$0xf0]  ;;  %v2858_v14 = vld [vmem:[#allocation5 + $0x27c] sm:$0xf] }
  0x53   :  { %1333 = vmatpush.bf16.msra.mxu0 %v2162_v36  ;;  %v2042_v36 = vor.u32 %v2789_v27, %v2041_v25  ;;  %v2331_v17 = vld [vmem:[#allocation5 + $0x290] sm:$0xf0]  ;;  %v2906_v18 = vld [vmem:[#allocation5 + $0x3fc] sm:$0xf]  ;;  %v2804_v25 = vld [vmem:[#allocation5 + $0xcc] sm:$0xf] }
  0x54   :  { %1347 = vmatpush.bf16.msra.mxu1 %v2354_v37  ;;  %v2017_v37 = vld [vmem:[#allocation5 + $0x8] sm:$0xf]  ;;  %v2523_v19 = vld [vmem:[#allocation5 + $0x410] sm:$0xf0]  ;;  %v2954_v20 = vld [vmem:[#allocation5 + $0x57c] sm:$0xf] }
  0x55   :  { %1361 = vmatpush.bf16.msra.mxu2 %v2546_v38  ;;  %v2783_v38 = vld [vmem:[#allocation5 + $0x1c] sm:$0xf0]  ;;  %v2715_v21 = vld [vmem:[#allocation5 + $0x590] sm:$0xf0]  ;;  %v2115_v27 = vld [vmem:[#allocation5 + $0xe0] sm:$0xf0] }
  0x56   :  { %1375 = vmatpush.bf16.msra.mxu3 %v2738_v42  ;;  %v2831_v42 = vld [vmem:[#allocation5 + $0x19c] sm:$0xf0]  ;;  %v2018_v51 = vor.u32 %v2783_v38, %v2017_v37  ;;  %v2852_v28 = vld [vmem:[#allocation5 + $0x24c] sm:$0xf]  ;;  %v2307_v30 = vld [vmem:[#allocation5 + $0x260] sm:$0xf0] }
  0x57   :  { %1334 = vmatpush.bf16.msra.mxu0 %v2138_v48  ;;  %v2822_v48 = vld [vmem:[#allocation5 + $0x15c] sm:$0xf]  ;;  %v2210_v55 = vor.u32 %v2831_v42, %v2209_v41  ;;  %v2900_v31 = vld [vmem:[#allocation5 + $0x3cc] sm:$0xf]  ;;  %v2499_v32 = vld [vmem:[#allocation5 + $0x3e0] sm:$0xf0]  ;;  %v2310_v37 = vor.u32 %v2852_v28, %v2307_v30 }
  0x58   :  { %1348 = vmatpush.bf16.msra.mxu1 %v2330_v49  ;;  %v2187_v49 = vld [vmem:[#allocation5 + $0x170] sm:$0xf0]  ;;  %v2948_v34 = vld [vmem:[#allocation5 + $0x54c] sm:$0xf]  ;;  %v2691_v35 = vld [vmem:[#allocation5 + $0x560] sm:$0xf0]  ;;  %v2502_v38 = vor.u32 %v2900_v31, %v2499_v32 }
  0x59   :  { %1362 = vmatpush.bf16.msra.mxu2 %v2522_v50  ;;  %v2870_v50 = vld [vmem:[#allocation5 + $0x2dc] sm:$0xf]  ;;  %v2694_v42 = vor.u32 %v2948_v34, %v2691_v35  ;;  %v2283_v43 = vld [vmem:[#allocation5 + $0x230] sm:$0xf0]  ;;  %v2577_v28 = vld [vmem:[#allocation5 + $0x460] sm:$0xf] }
  0x5a   :  { %1376 = vmatpush.bf16.msra.mxu3 %v2714_v54  ;;  %v2571_v54 = vld [vmem:[#allocation5 + $0x470] sm:$0xf0]  ;;  %v2846_v41 = vld [vmem:[#allocation5 + $0x21c] sm:$0xf]  ;;  %v2769_v32 = vld [vmem:[#allocation5 + $0x5e0] sm:$0xf] }
  0x5b   :  { %1335 = vmatpush.bf16.msra.mxu0 %v2114_v60  ;;  %v2190_v60 = vor.u32 %v2822_v48, %v2187_v49  ;;  %v2475_v45 = vld [vmem:[#allocation5 + $0x3b0] sm:$0xf0]  ;;  %v2942_v46 = vld [vmem:[#allocation5 + $0x51c] sm:$0xf]  ;;  %v2286_v49 = vor.u32 %v2846_v41, %v2283_v43  ;;  %v2970_v34 = vld [vmem:[#allocation5 + $0x5f4] sm:$0xf0] }
  0x5c   :  { %1349 = vmatpush.bf16.msra.mxu1 %v2306_v61  ;;  %v2382_v61 = vor.u32 %v2870_v50, %v2379_v52  ;;  %v2667_v47 = vld [vmem:[#allocation5 + $0x530] sm:$0xf0]  ;;  %v2067_v52 = vld [vmem:[#allocation5 + $0x80] sm:$0xf0]  ;;  %v2361_v41 = vld [vmem:[#allocation5 + $0x2b0] sm:$0xf] }
  0x5d   :  { %1363 = vmatpush.bf16.msra.mxu2 %v2498_v62  ;;  %v2574_v62 = vor.u32 %v2918_v53, %v2571_v54  ;;  %v2840_v53 = vld [vmem:[#allocation5 + $0x1ec] sm:$0xf]  ;;  %v2670_v54 = vor.u32 %v2942_v46, %v2667_v47  ;;  %v2868_v43 = vld [vmem:[#allocation5 + $0x2c4] sm:$0xf0]  ;;  %v2745_v46 = vld [vmem:[#allocation5 + $0x5b0] sm:$0xf] }
  0x5e   :  { %1377 = vmatpush.bf16.msra.mxu3 %v2690_v2  ;;  %v2766_v2 = vor.u32 %v2966_v57, %v2763_v58  ;;  %v2451_v57 = vld [vmem:[#allocation5 + $0x380] sm:$0xf0]  ;;  %v2936_v58 = vld [vmem:[#allocation5 + $0x4ec] sm:$0xf]  ;;  %v2964_v47 = vld [vmem:[#allocation5 + $0x5c4] sm:$0xf0] }
  0x5f   :  { %1336 = vmatpush.bf16.msra.mxu0 %v2090_v9  ;;  %v2166_v9 = vor.u32 %v2816_v63, %v2163_v0  ;;  %v2786_v63 = vld [vmem:[#allocation5 + $0x3c] sm:$0xf]  ;;  %v2043_v0 = vld [vmem:[#allocation5 + $0x50] sm:$0xf0]  ;;  %s3090_s0 = smov [#allocation7]   ;;  %s1977_s25 = sshll.u32 %s3600_s2, 4  ;;  %s1978_s25 = int_to_ptr.hbm [resolvable:$true] %s1977_s25 }
  0x60   :  { %1350 = vmatpush.bf16.msra.mxu1 %v2282_v10  ;;  %v2358_v10 = vor.u32 %v2864_v1, %v2355_v3  ;;  %v2834_v1 = vld [vmem:[#allocation5 + $0x1bc] sm:$0xf]  ;;  %v2235_v3 = vld [vmem:[#allocation5 + $0x1d0] sm:$0xf0]  ;;  %s1975_s1 = sshll.u32 %s3090_s0, 4  ;;  %s1976_s1 = int_to_ptr.vmem [resolvable:$true] %s1975_s1 }
  0x61   :  { %1364 = vmatpush.bf16.msra.mxu2 %v2474_v11  ;;  %v2550_v11 = vor.u32 %v2912_v4, %v2547_v5  ;;  %v2882_v4 = vld [vmem:[#allocation5 + $0x33c] sm:$0xf]  ;;  %v2427_v5 = vld [vmem:[#allocation5 + $0x350] sm:$0xf0] }
  0x62   :  { %1378 = vmatpush.bf16.msra.mxu3 %v2666_v16  ;;  %v2742_v16 = vor.u32 %v2960_v6, %v2739_v7  ;;  %v2930_v6 = vld [vmem:[#allocation5 + $0x4bc] sm:$0xf]  ;;  %v2619_v7 = vld [vmem:[#allocation5 + $0x4d0] sm:$0xf0] }
  0x63   :  { %1337 = vmatpush.bf16.msra.mxu0 %v2066_v22  ;;  %v2142_v22 = vor.u32 %v2810_v12, %v2139_v13  ;;  %v2238_v12 = vor.u32 %v2834_v1, %v2235_v3  ;;  %v2430_v13 = vor.u32 %v2882_v4, %v2427_v5  ;;  %v2313_v1 = vld [vmem:[#allocation5 + $0x250] sm:$0xf]  ;;  %v2856_v3 = vld [vmem:[#allocation5 + $0x264] sm:$0xf0] }
  0x64   :  { %1351 = vmatpush.bf16.msra.mxu1 %v2258_v23  ;;  %v2334_v23 = vor.u32 %v2858_v14, %v2331_v17  ;;  %v2828_v14 = vld [vmem:[#allocation5 + $0x18c] sm:$0xf]  ;;  %v2505_v4 = vld [vmem:[#allocation5 + $0x3d0] sm:$0xf]  ;;  %v2904_v5 = vld [vmem:[#allocation5 + $0x3e4] sm:$0xf0] }
  0x65   :  { %1365 = vmatpush.bf16.msra.mxu2 %v2450_v24  ;;  %v2526_v24 = vor.u32 %v2906_v18, %v2523_v19  ;;  %v2876_v17 = vld [vmem:[#allocation5 + $0x30c] sm:$0xf]  ;;  %v2622_v18 = vor.u32 %v2930_v6, %v2619_v7  ;;  %v2403_v19 = vld [vmem:[#allocation5 + $0x320] sm:$0xf0]  ;;  %v2697_v6 = vld [vmem:[#allocation5 + $0x550] sm:$0xf] }
  0x66   :  { %1379 = vmatpush.bf16.msra.mxu3 %v2642_v29  ;;  %v2718_v29 = vor.u32 %v2954_v20, %v2715_v21  ;;  %v2924_v20 = vld [vmem:[#allocation5 + $0x48c] sm:$0xf]  ;;  %v2595_v21 = vld [vmem:[#allocation5 + $0x4a0] sm:$0xf0]  ;;  %v2406_v31 = vor.u32 %v2876_v17, %v2403_v19  ;;  %v2952_v7 = vld [vmem:[#allocation5 + $0x564] sm:$0xf0] }
  0x67   :  { %1338 = vmatpush.bf16.msra.mxu0 %v2042_v36  ;;  %v2118_v36 = vor.u32 %v2804_v25, %v2115_v27  ;;  %v2874_v27 = vld [vmem:[#allocation5 + $0x2f4] sm:$0xf0]  ;;  %v2598_v35 = vor.u32 %v2924_v20, %v2595_v21  ;;  %v2673_v20 = vld [vmem:[#allocation5 + $0x520] sm:$0xf] }
  0x68   :  { %1352 = vmatpush.bf16.msra.mxu1 %v2234_v39  ;;  %v2798_v39 = vld [vmem:[#allocation5 + $0x9c] sm:$0xf]  ;;  %v2850_v17 = vld [vmem:[#allocation5 + $0x234] sm:$0xf0] }
  0x69   :  { %1366 = vmatpush.bf16.msra.mxu2 %v2426_v40  ;;  %v2091_v40 = vld [vmem:[#allocation5 + $0xb0] sm:$0xf0]  ;;  %v2898_v19 = vld [vmem:[#allocation5 + $0x3b4] sm:$0xf0] }
  0x6a   :  { %1380 = vmatpush.bf16.msra.mxu3 %v2618_v44  ;;  %v2894_v44 = vld [vmem:[#allocation5 + $0x39c] sm:$0xf]  ;;  %v2094_v48 = vor.u32 %v2798_v39, %v2091_v40  ;;  %v2169_v39 = vld [vmem:[#allocation5 + $0x130] sm:$0xf]  ;;  %v2820_v40 = vld [vmem:[#allocation5 + $0x144] sm:$0xf0] }
  0x6b   :  { %1339 = vmatpush.bf16.msra.mxu0 %v2018_v51  ;;  %v2478_v50 = vor.u32 %v2894_v44, %v2475_v45  ;;  %v2792_v51 = vld [vmem:[#allocation5 + $0x6c] sm:$0xf]  ;;  %v2553_v44 = vld [vmem:[#allocation5 + $0x430] sm:$0xf]  ;;  %v2916_v45 = vld [vmem:[#allocation5 + $0x444] sm:$0xf0] }
  0x6c   :  { %1353 = vmatpush.bf16.msra.mxu1 %v2210_v55  ;;  %v2259_v55 = vld [vmem:[#allocation5 + $0x200] sm:$0xf0]  ;;  %v2946_v21 = vld [vmem:[#allocation5 + $0x534] sm:$0xf0] }
  0x6d   :  { %1367 = vmatpush.bf16.msra.mxu2 %v2402_v56  ;;  %v2888_v56 = vld [vmem:[#allocation5 + $0x36c] sm:$0xf] }
  0x6e   :  { %1381 = vmatpush.bf16.msra.mxu3 %v2594_v59  ;;  %1340 = vmatmul.bf16.vlgmr.msra.gmra.mxu0 %v3121_v26  ;;  %v2643_v59 = vld [vmem:[#allocation5 + $0x500] sm:$0xf0] }
  0x6f   :  { %1388 = vmatpush.bf16.msrb.mxu0 %v2190_v60  ;;  %1354 = vmatmul.bf16.vlgmr.msra.gmra.mxu1 %v3123_v33  ;;  %v2070_v60 = vor.u32 %v2792_v51, %v2067_v52  ;;  %v2145_v51 = vld [vmem:[#allocation5 + $0x100] sm:$0xf]  ;;  %v2814_v52 = vld [vmem:[#allocation5 + $0x114] sm:$0xf0] }
  0x70   :  { %1402 = vmatpush.bf16.msrb.mxu1 %v2382_v61  ;;  %1368 = vmatmul.bf16.vlgmr.msra.gmra.mxu2 %v3115_v8  ;;  %v2262_v61 = vor.u32 %v2840_v53, %v2259_v55  ;;  %v2337_v53 = vld [vmem:[#allocation5 + $0x280] sm:$0xf]  ;;  %v2862_v55 = vld [vmem:[#allocation5 + $0x294] sm:$0xf0] }
  0x71   :  { %1416 = vmatpush.bf16.msrb.mxu2 %v2574_v62  ;;  %1382 = vmatmul.bf16.vlgmr.msra.gmra.mxu3 %v3117_v15  ;;  %v2454_v62 = vor.u32 %v2888_v56, %v2451_v57  ;;  %v2529_v56 = vld [vmem:[#allocation5 + $0x400] sm:$0xf]  ;;  %v2910_v57 = vld [vmem:[#allocation5 + $0x414] sm:$0xf0] }
  0x72   :  { %1430 = vmatpush.bf16.msrb.mxu3 %v2766_v2  ;;  %v2646_v2 = vor.u32 %v2936_v58, %v2643_v59  ;;  %v2721_v58 = vld [vmem:[#allocation5 + $0x580] sm:$0xf]  ;;  %v2958_v59 = vld [vmem:[#allocation5 + $0x594] sm:$0xf0] }
  0x73   :  { %1389 = vmatpush.bf16.msrb.mxu0 %v2166_v9  ;;  %v2046_v9 = vor.u32 %v2786_v63, %v2043_v0  ;;  %v2121_v63 = vld [vmem:[#allocation5 + $0xd0] sm:$0xf]  ;;  %v2808_v0 = vld [vmem:[#allocation5 + $0xe4] sm:$0xf0] }
  0x74   :  { %1403 = vmatpush.bf16.msrb.mxu1 %v2358_v10  ;;  %v2780_v10 = vld [vmem:[#allocation5 + $0xc] sm:$0xf] }
  0x75   :  { %1417 = vmatpush.bf16.msrb.mxu2 %v2550_v11  ;;  %v2019_v11 = vld [vmem:[#allocation5 + $0x20] sm:$0xf0] }
  0x76   :  { %1431 = vmatpush.bf16.msrb.mxu3 %v2742_v16  ;;  %v2211_v16 = vld [vmem:[#allocation5 + $0x1a0] sm:$0xf0]  ;;  %v2022_v25 = vor.u32 %v2780_v10, %v2019_v11  ;;  %v2314_v10 = vor.u32 %v2856_v3, %v2313_v1  ;;  %v2506_v11 = vor.u32 %v2904_v5, %v2505_v4 }
  0x77   :  { %1390 = vmatpush.bf16.msrb.mxu0 %v2142_v22  ;;  %v2193_v22 = vld [vmem:[#allocation5 + $0x160] sm:$0xf]  ;;  %v2214_v30 = vor.u32 %v2828_v14, %v2211_v16  ;;  %v2698_v16 = vor.u32 %v2952_v7, %v2697_v6  ;;  %v2919_v1 = vld [vmem:[#allocation5 + $0x464] sm:$0xf]  ;;  %v2771_v6 = vld [vmem:[#allocation5 + $0x5f8] sm:$0xf0] }
  0x78   :  { %1404 = vmatpush.bf16.msrb.mxu1 %v2334_v23  ;;  %v2826_v23 = vld [vmem:[#allocation5 + $0x174] sm:$0xf0]  ;;  %v2289_v14 = vld [vmem:[#allocation5 + $0x220] sm:$0xf]  ;;  %v2967_v5 = vld [vmem:[#allocation5 + $0x5e4] sm:$0xf] }
  0x79   :  { %1418 = vmatpush.bf16.msrb.mxu2 %v2526_v24  ;;  %v2385_v24 = vld [vmem:[#allocation5 + $0x2e0] sm:$0xf] }
  0x7a   :  { %1432 = vmatpush.bf16.msrb.mxu3 %v2718_v29  ;;  %v2922_v29 = vld [vmem:[#allocation5 + $0x474] sm:$0xf0] }
  0x7b   :  { %1391 = vmatpush.bf16.msrb.mxu0 %v2118_v36  ;;  %v2194_v36 = vor.u32 %v2826_v23, %v2193_v22  ;;  %v2290_v23 = vor.u32 %v2850_v17, %v2289_v14  ;;  %v2865_v14 = vld [vmem:[#allocation5 + $0x2b4] sm:$0xf]  ;;  %v2363_v17 = vld [vmem:[#allocation5 + $0x2c8] sm:$0xf0] }
  0x7c   :  { %1405 = vmatpush.bf16.msrb.mxu1 %v2310_v37  ;;  %v2386_v37 = vor.u32 %v2874_v27, %v2385_v24  ;;  %v2796_v27 = vld [vmem:[#allocation5 + $0x84] sm:$0xf0] }
  0x7d   :  { %1419 = vmatpush.bf16.msrb.mxu2 %v2502_v38  ;;  %v2578_v38 = vor.u32 %v2922_v29, %v2577_v28  ;;  %v2265_v28 = vld [vmem:[#allocation5 + $0x1f0] sm:$0xf]  ;;  %v2674_v29 = vor.u32 %v2946_v21, %v2673_v20  ;;  %v2961_v20 = vld [vmem:[#allocation5 + $0x5b4] sm:$0xf]  ;;  %v2747_v21 = vld [vmem:[#allocation5 + $0x5c8] sm:$0xf0] }
  0x7e   :  { %1433 = vmatpush.bf16.msrb.mxu3 %v2694_v42  ;;  %v2770_v42 = vor.u32 %v2970_v34, %v2769_v32  ;;  %v2892_v32 = vld [vmem:[#allocation5 + $0x384] sm:$0xf0]  ;;  %v2649_v34 = vld [vmem:[#allocation5 + $0x4f0] sm:$0xf] }
  0x7f   :  { %1392 = vmatpush.bf16.msrb.mxu0 %v2094_v48  ;;  %v2170_v48 = vor.u32 %v2820_v40, %v2169_v39  ;;  %v2049_v39 = vld [vmem:[#allocation5 + $0x40] sm:$0xf]  ;;  %v2790_v40 = vld [vmem:[#allocation5 + $0x54] sm:$0xf0] }
  0x80   :  { %1406 = vmatpush.bf16.msrb.mxu1 %v2286_v49  ;;  %v2362_v49 = vor.u32 %v2868_v43, %v2361_v41  ;;  %v2241_v41 = vld [vmem:[#allocation5 + $0x1c0] sm:$0xf]  ;;  %v2838_v43 = vld [vmem:[#allocation5 + $0x1d4] sm:$0xf0] }
  0x81   :  { %1420 = vmatpush.bf16.msrb.mxu2 %v2478_v50  ;;  %v2554_v50 = vor.u32 %v2916_v45, %v2553_v44  ;;  %v2433_v44 = vld [vmem:[#allocation5 + $0x340] sm:$0xf]  ;;  %v2886_v45 = vld [vmem:[#allocation5 + $0x354] sm:$0xf0] }
  0x82   :  { %1434 = vmatpush.bf16.msrb.mxu3 %v2670_v54  ;;  %v2746_v54 = vor.u32 %v2964_v47, %v2745_v46  ;;  %v2625_v46 = vld [vmem:[#allocation5 + $0x4c0] sm:$0xf]  ;;  %v2934_v47 = vld [vmem:[#allocation5 + $0x4d4] sm:$0xf0] }
  0x83   :  { %1393 = vmatpush.bf16.msrb.mxu0 %v2070_v60  ;;  %v2146_v60 = vor.u32 %v2814_v52, %v2145_v51  ;;  %v2242_v51 = vor.u32 %v2838_v43, %v2241_v41  ;;  %v2434_v52 = vor.u32 %v2886_v45, %v2433_v44  ;;  %v2853_v41 = vld [vmem:[#allocation5 + $0x254] sm:$0xf]  ;;  %v2315_v43 = vld [vmem:[#allocation5 + $0x268] sm:$0xf0] }
  0x84   :  { %1407 = vmatpush.bf16.msrb.mxu1 %v2262_v61  ;;  %v2338_v61 = vor.u32 %v2862_v55, %v2337_v53  ;;  %v2217_v53 = vld [vmem:[#allocation5 + $0x190] sm:$0xf]  ;;  %v2901_v44 = vld [vmem:[#allocation5 + $0x3d4] sm:$0xf]  ;;  %v2507_v45 = vld [vmem:[#allocation5 + $0x3e8] sm:$0xf0] }
  0x85   :  { %1421 = vmatpush.bf16.msrb.mxu2 %v2454_v62  ;;  %v2530_v62 = vor.u32 %v2910_v57, %v2529_v56  ;;  %v2409_v55 = vld [vmem:[#allocation5 + $0x310] sm:$0xf]  ;;  %v2626_v56 = vor.u32 %v2934_v47, %v2625_v46  ;;  %v2880_v57 = vld [vmem:[#allocation5 + $0x324] sm:$0xf0]  ;;  %v2949_v46 = vld [vmem:[#allocation5 + $0x554] sm:$0xf] }
  0x86   :  { %1435 = vmatpush.bf16.msrb.mxu3 %v2646_v2  ;;  %v2722_v2 = vor.u32 %v2958_v59, %v2721_v58  ;;  %v2601_v58 = vld [vmem:[#allocation5 + $0x490] sm:$0xf]  ;;  %v2928_v59 = vld [vmem:[#allocation5 + $0x4a4] sm:$0xf0]  ;;  %v2410_v4 = vor.u32 %v2880_v57, %v2409_v55  ;;  %v2699_v47 = vld [vmem:[#allocation5 + $0x568] sm:$0xf0] }
  0x87   :  { %1394 = vmatpush.bf16.msrb.mxu0 %v2046_v9  ;;  %v2122_v9 = vor.u32 %v2808_v0, %v2121_v63  ;;  %v2387_v0 = vld [vmem:[#allocation5 + $0x2f8] sm:$0xf0]  ;;  %v2602_v7 = vor.u32 %v2928_v59, %v2601_v58  ;;  %v2943_v58 = vld [vmem:[#allocation5 + $0x524] sm:$0xf] }
  0x88   :  { %1408 = vmatpush.bf16.msrb.mxu1 %v2238_v12  ;;  %v2097_v12 = vld [vmem:[#allocation5 + $0xa0] sm:$0xf]  ;;  %v2291_v55 = vld [vmem:[#allocation5 + $0x238] sm:$0xf0] }
  0x89   :  { %1422 = vmatpush.bf16.msrb.mxu2 %v2430_v13  ;;  %v2802_v13 = vld [vmem:[#allocation5 + $0xb4] sm:$0xf0]  ;;  %v2483_v57 = vld [vmem:[#allocation5 + $0x3b8] sm:$0xf0] }
  0x8a   :  { %1436 = vmatpush.bf16.msrb.mxu3 %v2622_v18  ;;  %v2481_v18 = vld [vmem:[#allocation5 + $0x3a0] sm:$0xf]  ;;  %v2098_v22 = vor.u32 %v2802_v13, %v2097_v12  ;;  %v2817_v12 = vld [vmem:[#allocation5 + $0x134] sm:$0xf]  ;;  %v2171_v13 = vld [vmem:[#allocation5 + $0x148] sm:$0xf0] }
  0x8b   :  { %1395 = vmatpush.bf16.msrb.mxu0 %v2022_v25  ;;  %v2482_v24 = vor.u32 %v2898_v19, %v2481_v18  ;;  %v2073_v25 = vld [vmem:[#allocation5 + $0x70] sm:$0xf]  ;;  %v2913_v18 = vld [vmem:[#allocation5 + $0x434] sm:$0xf]  ;;  %v2555_v19 = vld [vmem:[#allocation5 + $0x448] sm:$0xf0] }
  0x8c   :  { %1409 = vmatpush.bf16.msrb.mxu1 %v2214_v30  ;;  %v2844_v30 = vld [vmem:[#allocation5 + $0x204] sm:$0xf0]  ;;  %v2675_v59 = vld [vmem:[#allocation5 + $0x538] sm:$0xf0] }
  0x8d   :  { %1423 = vmatpush.bf16.msrb.mxu2 %v2406_v31  ;;  %v2457_v31 = vld [vmem:[#allocation5 + $0x370] sm:$0xf] }
  0x8e   :  { %1437 = vmatpush.bf16.msrb.mxu3 %v2598_v35  ;;  %1396 = vmatmul.bf16.vlgmr.msrb.gmra.mxu0 %v3121_v26  ;;  %v2940_v35 = vld [vmem:[#allocation5 + $0x504] sm:$0xf0] }
  0x8f   :  { %1444 = vmatpush.bf16.msra.mxu0 %v2194_v36  ;;  %1410 = vmatmul.bf16.vlgmr.msrb.gmra.mxu1 %v3123_v33  ;;  %v2074_v36 = vor.u32 %v2796_v27, %v2073_v25  ;;  %v2811_v25 = vld [vmem:[#allocation5 + $0x104] sm:$0xf]  ;;  %v2147_v27 = vld [vmem:[#allocation5 + $0x118] sm:$0xf0] }
  0x90   :  { %1458 = vmatpush.bf16.msra.mxu1 %v2386_v37  ;;  %1424 = vmatmul.bf16.vlgmr.msrb.gmra.mxu2 %v3115_v8  ;;  %v2266_v37 = vor.u32 %v2844_v30, %v2265_v28  ;;  %v2859_v28 = vld [vmem:[#allocation5 + $0x284] sm:$0xf]  ;;  %v2339_v30 = vld [vmem:[#allocation5 + $0x298] sm:$0xf0] }
  0x91   :  { %1472 = vmatpush.bf16.msra.mxu2 %v2578_v38  ;;  %1438 = vmatmul.bf16.vlgmr.msrb.gmra.mxu3 %v3117_v15  ;;  %v2458_v38 = vor.u32 %v2892_v32, %v2457_v31  ;;  %v2907_v31 = vld [vmem:[#allocation5 + $0x404] sm:$0xf]  ;;  %v2531_v32 = vld [vmem:[#allocation5 + $0x418] sm:$0xf0] }
  0x92   :  { %1486 = vmatpush.bf16.msra.mxu3 %v2770_v42  ;;  %v2650_v42 = vor.u32 %v2940_v35, %v2649_v34  ;;  %v2955_v34 = vld [vmem:[#allocation5 + $0x584] sm:$0xf]  ;;  %v2723_v35 = vld [vmem:[#allocation5 + $0x598] sm:$0xf0] }
  0x93   :  { %1445 = vmatpush.bf16.msra.mxu0 %v2170_v48  ;;  %v2050_v48 = vor.u32 %v2790_v40, %v2049_v39  ;;  %v2805_v39 = vld [vmem:[#allocation5 + $0xd4] sm:$0xf]  ;;  %v2123_v40 = vld [vmem:[#allocation5 + $0xe8] sm:$0xf0] }
  0x94   :  { %1459 = vmatpush.bf16.msra.mxu1 %v2362_v49  ;;  %v2025_v49 = vld [vmem:[#allocation5 + $0x10] sm:$0xf] }
  0x95   :  { %1473 = vmatpush.bf16.msra.mxu2 %v2554_v50  ;;  %v2784_v50 = vld [vmem:[#allocation5 + $0x24] sm:$0xf0] }
  0x96   :  { %1487 = vmatpush.bf16.msra.mxu3 %v2746_v54  ;;  %v2832_v54 = vld [vmem:[#allocation5 + $0x1a4] sm:$0xf0]  ;;  %v2026_v63 = vor.u32 %v2784_v50, %v2025_v49  ;;  %v2318_v49 = vor.u32 %v2853_v41, %v2315_v43  ;;  %v2510_v50 = vor.u32 %v2901_v44, %v2507_v45 }
  0x97   :  { %1446 = vmatpush.bf16.msra.mxu0 %v2146_v60  ;;  %v2823_v60 = vld [vmem:[#allocation5 + $0x164] sm:$0xf]  ;;  %v2218_v3 = vor.u32 %v2832_v54, %v2217_v53  ;;  %v2702_v54 = vor.u32 %v2949_v46, %v2699_v47 }
  0x98   :  { %1460 = vmatpush.bf16.msra.mxu1 %v2338_v61  ;;  %v2195_v61 = vld [vmem:[#allocation5 + $0x178] sm:$0xf0]  ;;  %v2847_v53 = vld [vmem:[#allocation5 + $0x224] sm:$0xf] }
  0x99   :  { %1474 = vmatpush.bf16.msra.mxu2 %v2530_v62  ;;  %v2871_v62 = vld [vmem:[#allocation5 + $0x2e4] sm:$0xf] }
  0x9a   :  { %1488 = vmatpush.bf16.msra.mxu3 %v2722_v2  ;;  %v2579_v2 = vld [vmem:[#allocation5 + $0x478] sm:$0xf0] }
  0x9b   :  { %1447 = vmatpush.bf16.msra.mxu0 %v2122_v9  ;;  %v2198_v9 = vor.u32 %v2823_v60, %v2195_v61  ;;  %v2294_v61 = vor.u32 %v2847_v53, %v2291_v55 }
  0x9c   :  { %1461 = vmatpush.bf16.msra.mxu1 %v2314_v10  ;;  %v2390_v10 = vor.u32 %v2871_v62, %v2387_v0  ;;  %v2075_v0 = vld [vmem:[#allocation5 + $0x88] sm:$0xf0] }
  0x9d   :  { %1475 = vmatpush.bf16.msra.mxu2 %v2506_v11  ;;  %v2582_v11 = vor.u32 %v2919_v1, %v2579_v2  ;;  %v2841_v1 = vld [vmem:[#allocation5 + $0x1f4] sm:$0xf]  ;;  %v2678_v2 = vor.u32 %v2943_v58, %v2675_v59 }
  0x9e   :  { %1489 = vmatpush.bf16.msra.mxu3 %v2698_v16  ;;  %v2774_v16 = vor.u32 %v2967_v5, %v2771_v6  ;;  %v2459_v5 = vld [vmem:[#allocation5 + $0x388] sm:$0xf0]  ;;  %v2937_v6 = vld [vmem:[#allocation5 + $0x4f4] sm:$0xf] }
  0x9f   :  { %1448 = vmatpush.bf16.msra.mxu0 %v2098_v22  ;;  %v2174_v22 = vor.u32 %v2817_v12, %v2171_v13  ;;  %v2787_v12 = vld [vmem:[#allocation5 + $0x44] sm:$0xf]  ;;  %v2051_v13 = vld [vmem:[#allocation5 + $0x58] sm:$0xf0] }
  0xa0   :  { %1462 = vmatpush.bf16.msra.mxu1 %v2290_v23  ;;  %v2366_v23 = vor.u32 %v2865_v14, %v2363_v17  ;;  %v2835_v14 = vld [vmem:[#allocation5 + $0x1c4] sm:$0xf]  ;;  %v2243_v17 = vld [vmem:[#allocation5 + $0x1d8] sm:$0xf0] }
  0xa1   :  { %1476 = vmatpush.bf16.msra.mxu2 %v2482_v24  ;;  %v2558_v24 = vor.u32 %v2913_v18, %v2555_v19  ;;  %v2883_v18 = vld [vmem:[#allocation5 + $0x344] sm:$0xf]  ;;  %v2435_v19 = vld [vmem:[#allocation5 + $0x358] sm:$0xf0] }
  0xa2   :  { %1490 = vmatpush.bf16.msra.mxu3 %v2674_v29  ;;  %v2750_v29 = vor.u32 %v2961_v20, %v2747_v21  ;;  %v2931_v20 = vld [vmem:[#allocation5 + $0x4c4] sm:$0xf]  ;;  %v2627_v21 = vld [vmem:[#allocation5 + $0x4d8] sm:$0xf0] }
  0xa3   :  { %1449 = vmatpush.bf16.msra.mxu0 %v2074_v36  ;;  %v2150_v36 = vor.u32 %v2811_v25, %v2147_v27  ;;  %v2781_v25 = vld [vmem:[#allocation5 + $0x14] sm:$0xf]  ;;  %v2027_v27 = vld [vmem:[#allocation5 + $0x28] sm:$0xf0] }
  0xa4   :  { %1463 = vmatpush.bf16.msra.mxu1 %v2266_v37  ;;  %v2342_v37 = vor.u32 %v2859_v28, %v2339_v30  ;;  %v2829_v28 = vld [vmem:[#allocation5 + $0x194] sm:$0xf]  ;;  %v2219_v30 = vld [vmem:[#allocation5 + $0x1a8] sm:$0xf0] }
  0xa5   :  { %1477 = vmatpush.bf16.msra.mxu2 %v2458_v38  ;;  %v2534_v38 = vor.u32 %v2907_v31, %v2531_v32  ;;  %v2877_v31 = vld [vmem:[#allocation5 + $0x314] sm:$0xf]  ;;  %v2411_v32 = vld [vmem:[#allocation5 + $0x328] sm:$0xf0] }
  0xa6   :  { %1491 = vmatpush.bf16.msra.mxu3 %v2650_v42  ;;  %v2726_v42 = vor.u32 %v2955_v34, %v2723_v35  ;;  %v2925_v34 = vld [vmem:[#allocation5 + $0x494] sm:$0xf]  ;;  %v2603_v35 = vld [vmem:[#allocation5 + $0x4a8] sm:$0xf0] }
  0xa7   :  { %1450 = vmatpush.bf16.msra.mxu0 %v2050_v48  ;;  %v2126_v48 = vor.u32 %v2805_v39, %v2123_v40  ;;  %v2606_v39 = vor.u32 %v2925_v34, %v2603_v35 }
  0xa8   :  { %1464 = vmatpush.bf16.msra.mxu1 %v2242_v51  ;;  %v2799_v51 = vld [vmem:[#allocation5 + $0xa4] sm:$0xf] }
  0xa9   :  { %1478 = vmatpush.bf16.msra.mxu2 %v2434_v52  ;;  %v2099_v52 = vld [vmem:[#allocation5 + $0xb8] sm:$0xf0] }
  0xaa   :  { %1492 = vmatpush.bf16.msra.mxu3 %v2626_v56  ;;  %v2895_v56 = vld [vmem:[#allocation5 + $0x3a4] sm:$0xf]  ;;  %v2102_v60 = vor.u32 %v2799_v51, %v2099_v52 }
  0xab   :  { %1451 = vmatpush.bf16.msra.mxu0 %v2026_v63  ;;  %v2486_v62 = vor.u32 %v2895_v56, %v2483_v57  ;;  %v2793_v63 = vld [vmem:[#allocation5 + $0x74] sm:$0xf] }
  0xac   :  { %1465 = vmatpush.bf16.msra.mxu1 %v2218_v3  ;;  %v2267_v3 = vld [vmem:[#allocation5 + $0x208] sm:$0xf0] }
  0xad   :  { %1479 = vmatpush.bf16.msra.mxu2 %v2410_v4  ;;  %v2889_v4 = vld [vmem:[#allocation5 + $0x374] sm:$0xf] }
  0xae   :  { %1493 = vmatpush.bf16.msra.mxu3 %v2602_v7  ;;  %1452 = vmatmul.bf16.vlgmr.msra.gmra.mxu0 %v3121_v26  ;;  %v2651_v7 = vld [vmem:[#allocation5 + $0x508] sm:$0xf0] }
  0xaf   :  { %1500 = vmatpush.bf16.msrb.mxu0 %v2198_v9  ;;  %1466 = vmatmul.bf16.vlgmr.msra.gmra.mxu1 %v3123_v33  ;;  %v2078_v9 = vor.u32 %v2793_v63, %v2075_v0  ;;  %v1229_v40 = vpop.f32.mrf.mxu0 }
  0xb0   :  { %1514 = vmatpush.bf16.msrb.mxu1 %v2390_v10  ;;  %1480 = vmatmul.bf16.vlgmr.msra.gmra.mxu2 %v3115_v8  ;;  %v2270_v10 = vor.u32 %v2841_v1, %v2267_v3  ;;  %v1243_v41 = vpop.f32.mrf.mxu1 }
  0xb1   :  { %1528 = vmatpush.bf16.msrb.mxu2 %v2582_v11  ;;  %1494 = vmatmul.bf16.vlgmr.msra.gmra.mxu3 %v3117_v15  ;;  %v2462_v11 = vor.u32 %v2889_v4, %v2459_v5  ;;  %v3089_v4 = vmov 0.7853982  }
  0xb2   :  { %1542 = vmatpush.bf16.msrb.mxu3 %v2774_v16  ;;  %v2654_v16 = vor.u32 %v2937_v6, %v2651_v7  ;;  %v1244_v6 = vadd.f32 %v1243_v41, %v1229_v40 }
  0xb3   :  { %1501 = vmatpush.bf16.msrb.mxu0 %v2174_v22  ;;  %v2054_v22 = vor.u32 %v2787_v12, %v2051_v13 }
  0xb4   :  { %1515 = vmatpush.bf16.msrb.mxu1 %v2366_v23  ;;  %v2246_v23 = vor.u32 %v2835_v14, %v2243_v17  ;;  %v1271_v43 = vpop.f32.mrf.mxu3 }
  0xb5   :  { %1529 = vmatpush.bf16.msrb.mxu2 %v2558_v24  ;;  %v2438_v24 = vor.u32 %v2883_v18, %v2435_v19 }
  0xb6   :  { %1543 = vmatpush.bf16.msrb.mxu3 %v2750_v29  ;;  %v2630_v29 = vor.u32 %v2931_v20, %v2627_v21 }
  0xb7   :  { %1502 = vmatpush.bf16.msrb.mxu0 %v2150_v36  ;;  %v2030_v36 = vor.u32 %v2781_v25, %v2027_v27  ;;  %v1231_v44 = vpop.f32.mrf.mxu0 }
  0xb8   :  { %1516 = vmatpush.bf16.msrb.mxu1 %v2342_v37  ;;  %v2222_v37 = vor.u32 %v2829_v28, %v2219_v30  ;;  %v1245_v45 = vpop.f32.mrf.mxu1 }
  0xb9   :  { %1530 = vmatpush.bf16.msrb.mxu2 %v2534_v38  ;;  %v2414_v38 = vor.u32 %v2877_v31, %v2411_v32  ;;  %v1246_v14 = vadd.f32 %v1245_v45, %v1231_v44 }
  0xba   :  { %1544 = vmatpush.bf16.msrb.mxu3 %v2726_v42  ;;  %v1257_v42 = vpop.f32.mrf.mxu2 }
  0xbb   :  { %1503 = vmatpush.bf16.msrb.mxu0 %v2126_v48 }
  0xbc   :  { %1517 = vmatpush.bf16.msrb.mxu1 %v2318_v49  ;;  %v1273_v47 = vpop.f32.mrf.mxu3 }
  0xbd   :  { %1531 = vmatpush.bf16.msrb.mxu2 %v2510_v50 }
  0xbe   :  { %1545 = vmatpush.bf16.msrb.mxu3 %v2702_v54 }
  0xbf   :  { %1504 = vmatpush.bf16.msrb.mxu0 %v2102_v60 }
  0xc0   :  { %1518 = vmatpush.bf16.msrb.mxu1 %v2294_v61 }
  0xc1   :  { %1532 = vmatpush.bf16.msrb.mxu2 %v2486_v62 }
  0xc2   :  { %1546 = vmatpush.bf16.msrb.mxu3 %v2678_v2  ;;  %v1259_v46 = vpop.f32.mrf.mxu2  ;;  %v3088_v2 = vmov 0.0  }
  0xc3   :  { %1505 = vmatpush.bf16.msrb.mxu0 %v2078_v9  ;;  %v1258_v9 = vadd.f32 %v1257_v42, %v1244_v6 }
  0xc4   :  { %1519 = vmatpush.bf16.msrb.mxu1 %v2270_v10 }
  0xc5   :  { %1533 = vmatpush.bf16.msrb.mxu2 %v2462_v11  ;;  %v3177_v12 = vadd.f32 %v1271_v43, %v1258_v9 }
  0xc6   :  { %1547 = vmatpush.bf16.msrb.mxu3 %v2654_v16 }
  0xc7   :  { %1506 = vmatpush.bf16.msrb.mxu0 %v2054_v22  ;;  %v1556_v20 = vmul.f32 %v3177_v12, %v3177_v12  ;;  %v3184_v21 = vand.u32 2147483647, %v3177_v12  ;;  %vm1645_vm2 = vcmp.ne.f32.partialorder %v3177_v12, %v3177_v12 }
  0xc8   :  { %1520 = vmatpush.bf16.msrb.mxu1 %v2246_v23  ;;  %v1260_v23 = vadd.f32 %v1259_v46, %v1246_v14 }
  0xc9   :  { %1534 = vmatpush.bf16.msrb.mxu2 %v2438_v24  ;;  %vm1651_vm5 = vcmp.eq.s32.totalorder %v3184_v21, inf }
  0xca   :  { %1548 = vmatpush.bf16.msrb.mxu3 %v2630_v29  ;;  %v3203_v32 = vadd.f32 %v1273_v47, %v1260_v23 }
  0xcb   :  { %1507 = vmatpush.bf16.msrb.mxu0 %v2030_v36  ;;  %v3147_v48 = vpop.f32.mrf.mxu0 }
  0xcc   :  { %1521 = vmatpush.bf16.msrb.mxu1 %v2222_v37  ;;  %v3149_v49 = vpop.f32.mrf.mxu1  ;;  %vm1825_vm8 = vcmp.ne.f32.partialorder %v3203_v32, %v3203_v32 }
  0xcd   :  { %1535 = vmatpush.bf16.msrb.mxu2 %v2414_v38  ;;  %v1559_v38 = vmul.f32 %v3203_v32, %v3203_v32 }
  0xce   :  { %1549 = vmatpush.bf16.msrb.mxu3 %v2606_v39  ;;  %1508 = vmatmul.bf16.vlgmr.msrb.gmra.mxu0 %v3121_v26  ;;  %v3214_v39 = vand.u32 2147483647, %v3203_v32 }
  0xcf   :  { %1522 = vmatmul.bf16.vlgmr.msrb.gmra.mxu1 %v3123_v33 }
  0xd0   :  { %1536 = vmatmul.bf16.vlgmr.msrb.gmra.mxu2 %v3115_v8  ;;  %vm1831_vm12 = vcmp.eq.s32.totalorder %v3214_v39, inf }
  0xd1   :  { %1550 = vmatmul.bf16.vlgmr.msrb.gmra.mxu3 %v3117_v15 }
  0xd3   :  { %v3151_v50 = vpop.f32.mrf.mxu2  ;;  %v3155_v33 = vpop.f32.mrf.mxu0 }
  0xd4   :  { %v3153_v26 = vpop.f32.mrf.mxu3  ;;  %v3157_v8 = vpop.f32.mrf.mxu1 }
  0xdb   :  { %v3159_v15 = vpop.f32.mrf.mxu2 }
  0xdc   :  { %v3161_v51 = vpop.f32.mrf.mxu3 }
  0xeb   :  { %v1341_v52 = vpop.f32.mrf.mxu0 }
  0xec   :  { %v1355_v53 = vpop.f32.mrf.mxu1 }
  0xed   :  { %v1356_v54 = vadd.f32 %v1355_v53, %v1341_v52 }
  0xf3   :  { %v1369_v55 = vpop.f32.mrf.mxu2  ;;  %v1343_v59 = vpop.f32.mrf.mxu0 }
  0xf4   :  { %v1370_v56 = vadd.f32 %v1369_v55, %v1356_v54  ;;  %v1383_v57 = vpop.f32.mrf.mxu3  ;;  %v1357_v60 = vpop.f32.mrf.mxu1 }
  0xf5   :  { %v1358_v61 = vadd.f32 %v1357_v60, %v1343_v59 }
  0xf6   :  { %v3163_v58 = vadd.f32 %v1383_v57, %v1370_v56  ;;  %v1300_v56 = vadd.f32 %v3149_v49, %v3147_v48 }
  0xfb   :  { %v1371_v62 = vpop.f32.mrf.mxu2 }
  0xfc   :  { %v1372_v63 = vadd.f32 %v1371_v62, %v1358_v61  ;;  %v1385_v0 = vpop.f32.mrf.mxu3 }
  0xfe   :  { %v3165_v1 = vadd.f32 %v1385_v0, %v1372_v63  ;;  %v1314_v63 = vadd.f32 %v3151_v50, %v1300_v56 }
 0x100   :  { %vm3601_vm0 = vcmp.lt.f32.partialorder %v3165_v1, 0.0  ;;  %vm1941_vm1 = vcmp.lt.s32.totalorder %v3165_v1, 0  ;;  %v3245_v50 = vadd.f32 %v3153_v26, %v1314_v63 }
 0x101   :  { %v3170_v3 = vsel %vm1941_vm1, 3.1415927, %v3088_v2  ;;  %v3175_v5 = vsel %vm3601_vm0, 2.3561945, %v3089_v4 }
 0x102   :  { %v1557_v26 = vmul.f32 %v3245_v50, %v3245_v50 }
 0x10b   :  { %v1397_v7 = vpop.f32.mrf.mxu0 }
 0x10c   :  { %v1411_v10 = vpop.f32.mrf.mxu1 }
 0x10d   :  { %v1412_v11 = vadd.f32 %v1411_v10, %v1397_v7 }
 0x113   :  { %v1425_v13 = vpop.f32.mrf.mxu2  ;;  %v1399_v19 = vpop.f32.mrf.mxu0 }
 0x114   :  { %v1426_v16 = vadd.f32 %v1425_v13, %v1412_v11  ;;  %v1439_v17 = vpop.f32.mrf.mxu3  ;;  %v1413_v22 = vpop.f32.mrf.mxu1 }
 0x115   :  { %v1414_v28 = vadd.f32 %v1413_v22, %v1399_v19 }
 0x116   :  { %v3179_v18 = vadd.f32 %v1439_v17, %v1426_v16 }
 0x118   :  { %v1562_v24 = vmul.f32 %v3179_v18, %v3179_v18  ;;  %v3191_v25 = vand.u32 2147483647, %v3179_v18  ;;  %vm1646_vm3 = vcmp.ne.f32.partialorder %v3179_v18, %v3179_v18 }
 0x119   :  { %vm3195_vm4 = vmor %vm1645_vm2, %vm1646_vm3 }
 0x11a   :  { %v1568_v29 = vadd.f32 %v1562_v24, %v1556_v20  ;;  %v1601_v30 = vmax.f32 %v3184_v21, %v3191_v25  ;;  %vm1652_vm6 = vcmp.eq.s32.totalorder %v3191_v25, inf  ;;  %v1600_v7 = vmin.f32 %v3184_v21, %v3191_v25 }
 0x11b   :  { %v1427_v31 = vpop.f32.mrf.mxu2  ;;  %vm3205_vm7 = vmand %vm1651_vm5, %vm1652_vm6 }
 0x11c   :  { %2980 = vlog2.f32 %v1568_v29  ;;  %v1441_v35 = vpop.f32.mrf.mxu3  ;;  %v1428_v36 = vadd.f32 %v1427_v31, %v1414_v28  ;;  %v1613_v57 = vand.u32 2147483648, %v1601_v30  ;;  %v1611_v60 = vand.u32 2147483647, %v1601_v30 }
 0x11d   :  { %2982 = vrcp.f32 %v1601_v30  ;;  %vm1607_vm15 = vweird.f32 %v1601_v30 }
 0x11e   :  { %v3209_v37 = vadd.f32 %v1441_v35, %v1428_v36  ;;  %v1614_v0 = vor.u32 1.1754944e-38, %v1613_v57  ;;  %vm1612_vm2 = vcmp.eq.f32.partialorder %v1611_v60, 8.507059e+37  ;;  %v1302_v35 = vadd.f32 %v3157_v8, %v3155_v33 }
 0x120   :  { %v1565_v40 = vmul.f32 %v3209_v37, %v3209_v37  ;;  %v3221_v41 = vand.u32 2147483647, %v3209_v37  ;;  %vm1826_vm9 = vcmp.ne.f32.partialorder %v3209_v37, %v3209_v37  ;;  %v1316_v56 = vadd.f32 %v3159_v15, %v1302_v35 }
 0x121   :  { %vm3225_vm10 = vmor %vm1825_vm8, %vm1826_vm9  ;;  %vm1705_vm9 = vcmp.ne.f32.partialorder %v3245_v50, %v3245_v50 }
 0x122   :  { %v2981_v42 = vpop.eup %2980  ;;  %v1571_v46 = vadd.f32 %v1565_v40, %v1559_v38  ;;  %v1781_v47 = vmax.f32 %v3214_v39, %v3221_v41  ;;  %vm1832_vm11 = vcmp.eq.s32.totalorder %v3221_v41, inf }
 0x123   :  { %v2983_v44 = vpop.eup %2982  ;;  %v1575_v45 = vmul.f32 0.6931472, %v2981_v42  ;;  %vm3233_vm13 = vmand %vm1831_vm12, %vm1832_vm11 }
 0x124   :  { %v1603_v52 = vmul.f32 %v2983_v44, %v1601_v30  ;;  %2984 = vlog2.f32 %v1571_v46  ;;  %vm1608_vm14 = vweird.f32 %v2983_v44  ;;  %v1793_v22 = vand.u32 2147483648, %v1781_v47 }
 0x125   :  { %v1586_v53 = vmul.f32 0.21714725, %v1575_v45  ;;  %2986 = vrcp.f32 %v1781_v47  ;;  %vm1609_vm1 = vmor %vm1607_vm15, %vm1608_vm14  ;;  %v1791_v24 = vand.u32 2147483647, %v1781_v47  ;;  %vm1787_vm5 = vweird.f32 %v1781_v47 }
 0x126   :  { %v1604_v54 = vsub.f32 1.0, %v1603_v52  ;;  %v1794_v40 = vor.u32 1.1754944e-38, %v1793_v22  ;;  %v1780_v45 = vmin.f32 %v3214_v39, %v3221_v41 }
 0x127   :  { %1592 = vst [vmem:[#allocation7] sm:$0xff] %v1586_v53  ;;  %vm1792_vm8 = vcmp.eq.f32.partialorder %v1791_v24, 8.507059e+37 }
 0x128   :  { %v1605_v59 = vmul.f32 %v2983_v44, %v1604_v54 }
 0x12a   :  { %v1606_v61 = vadd.f32 %v2983_v44, %v1605_v59  ;;  %v2985_v62 = vpop.eup %2984 }
 0x12b   :  { %v2987_v6 = vpop.eup %2986  ;;  %v1581_v10 = vmul.f32 0.6931472, %v2985_v62  ;;  %v1453_v48 = vpop.f32.mrf.mxu0 }
 0x12c   :  { %v1610_v9 = vsel %vm1609_vm1, %v2983_v44, %v1606_v61  ;;  %v1783_v11 = vmul.f32 %v2987_v6, %v1781_v47  ;;  %v1467_v13 = vpop.f32.mrf.mxu1  ;;  %vm1788_vm3 = vweird.f32 %v2987_v6  ;;  %v3259_v44 = vand.u32 2147483647, %v3245_v50 }
 0x12d   :  { %v1615_v49 = vsel %vm1612_vm2, %v1614_v0, %v1610_v9  ;;  %v1589_v16 = vmul.f32 0.21714725, %v1581_v10  ;;  %v1468_v17 = vadd.f32 %v1467_v13, %v1453_v48  ;;  %vm1789_vm6 = vmor %vm1787_vm5, %vm1788_vm3  ;;  %v3296_v10 = vadd.f32 %v3161_v51, %v1316_v56 }
 0x12e   :  { %v3242_v14 = vmul.f32 %v1615_v49, %v1600_v7  ;;  %v1784_v19 = vsub.f32 1.0, %v1783_v11  ;;  %vm1711_vm14 = vcmp.eq.s32.totalorder %v3259_v44, inf }
 0x12f   :  { %1595 = vst [vmem:[#allocation7 + $0x18] sm:$0xff] %v1589_v16  ;;  %vm1885_vm2 = vcmp.ne.f32.partialorder %v3296_v10, %v3296_v10 }
 0x130   :  { %v3249_v20 = vmul.f32 %v3242_v14, %v3242_v14  ;;  %v1785_v23 = vmul.f32 %v2987_v6, %v1784_v19  ;;  %v1560_v19 = vmul.f32 %v3296_v10, %v3296_v10 }
 0x132   :  { %v1618_v29 = vmul.f32 0.002785687, %v3249_v20  ;;  %v1786_v36 = vadd.f32 %v2987_v6, %v1785_v23 }
 0x133   :  { %v1481_v28 = vpop.f32.mrf.mxu2  ;;  %v1455_v53 = vpop.f32.mrf.mxu0 }
 0x134   :  { %v1482_v30 = vadd.f32 %v1481_v28, %v1468_v17  ;;  %v1495_v31 = vpop.f32.mrf.mxu3  ;;  %v1619_v38 = vadd.f32 -0.015866, %v1618_v29  ;;  %v1790_v46 = vsel %vm1789_vm6, %v2987_v6, %v1786_v36  ;;  %v1469_v54 = vpop.f32.mrf.mxu1  ;;  %v3312_v28 = vand.u32 2147483647, %v3296_v10 }
 0x135   :  { %v1795_v8 = vsel %vm1792_vm8, %v1794_v40, %v1790_v46  ;;  %v1470_v15 = vadd.f32 %v1469_v54, %v1455_v53  ;;  %vm1638_vm6 = vcmp.lt.f32.partialorder %v3177_v12, 0.0  ;;  %vm1641_vm8 = vcmp.lt.s32.totalorder %v3177_v12, 0 }
 0x136   :  { %v3256_v42 = vadd.f32 %v1495_v31, %v1482_v30  ;;  %v1620_v33 = vmul.f32 %v1619_v38, %v3249_v20  ;;  %v3272_v57 = vmul.f32 %v1795_v8, %v1780_v45 }
 0x138   :  { %v1563_v47 = vmul.f32 %v3256_v42, %v3256_v42  ;;  %v3267_v52 = vand.u32 2147483647, %v3256_v42  ;;  %vm1706_vm11 = vcmp.ne.f32.partialorder %v3256_v42, %v3256_v42  ;;  %v1621_v59 = vadd.f32 0.04247222, %v1620_v33 }
 0x139   :  { %vm3280_vm12 = vmor %vm1705_vm9, %vm1706_vm11  ;;  %v3286_v63 = vmul.f32 %v3272_v57, %v3272_v57  ;;  %vm1891_vm9 = vcmp.eq.s32.totalorder %v3312_v28, inf }
 0x13a   :  { %v1569_v60 = vadd.f32 %v1563_v47, %v1557_v26  ;;  %v3278_v61 = vmax.f32 %v3259_v44, %v3267_v52  ;;  %vm1712_vm15 = vcmp.eq.s32.totalorder %v3267_v52, inf  ;;  %v1622_v6 = vmul.f32 %v1621_v59, %v3249_v20 }
 0x13b   :  { %v1483_v0 = vpop.f32.mrf.mxu2  ;;  %vm3291_vm1 = vmand %vm1711_vm14, %vm1712_vm15  ;;  %v1798_v48 = vmul.f32 0.002785687, %v3286_v63 }
 0x13c   :  { %2988 = vlog2.f32 %v1569_v60  ;;  %v1497_v9 = vpop.f32.mrf.mxu3  ;;  %v1484_v49 = vadd.f32 %v1483_v0, %v1470_v15  ;;  %v1623_v11 = vadd.f32 -0.074975304, %v1622_v6  ;;  %v1671_v54 = vand.u32 2147483647, %v3278_v61 }
 0x13d   :  { %2990 = vrcp.f32 %v3278_v61  ;;  %v1799_v13 = vadd.f32 -0.015866, %v1798_v48  ;;  %v1673_v56 = vand.u32 2147483648, %v3278_v61  ;;  %v3340_v15 = vsel %vm1641_vm8, 3.1415927, %v3088_v2 }
 0x13e   :  { %v3300_v16 = vadd.f32 %v1497_v9, %v1484_v49  ;;  %v1624_v17 = vmul.f32 %v1623_v11, %v3249_v20  ;;  %v3345_v0 = vsel %vm1638_vm6, 2.3561945, %v3089_v4  ;;  %vm1818_vm8 = vcmp.lt.f32.partialorder %v3203_v32, 0.0 }
 0x13f   :  { %v1800_v22 = vmul.f32 %v1799_v13, %v3286_v63 }
 0x140   :  { %v1566_v51 = vmul.f32 %v3300_v16, %v3300_v16  ;;  %v3309_v23 = vand.u32 2147483647, %v3300_v16  ;;  %v1625_v29 = vadd.f32 0.1064488, %v1624_v17  ;;  %vm1886_vm3 = vcmp.ne.f32.partialorder %v3300_v16, %v3300_v16 }
 0x141   :  { %v1801_v31 = vadd.f32 0.04247222, %v1800_v22  ;;  %vm3318_vm5 = vmor %vm1885_vm2, %vm1886_vm3  ;;  %vm1821_vm2 = vcmp.lt.s32.totalorder %v3203_v32, 0  ;;  %vm1667_vm3 = vweird.f32 %v3278_v61  ;;  %v1660_v17 = vmin.f32 %v3259_v44, %v3267_v52 }
 0x142   :  { %v2989_v24 = vpop.eup %2988  ;;  %v1572_v36 = vadd.f32 %v1566_v51, %v1560_v19  ;;  %v1626_v38 = vmul.f32 %v1625_v29, %v3249_v20  ;;  %v3327_v45 = vmax.f32 %v3312_v28, %v3309_v23  ;;  %vm1892_vm14 = vcmp.eq.s32.totalorder %v3309_v23, inf }
 0x143   :  { %v2991_v30 = vpop.eup %2990  ;;  %v1577_v35 = vmul.f32 0.6931472, %v2989_v24  ;;  %v1802_v46 = vmul.f32 %v1801_v31, %v3286_v63  ;;  %vm3348_vm15 = vmand %vm1891_vm9, %vm1892_vm14  ;;  %v1674_v19 = vor.u32 1.1754944e-38, %v1673_v56  ;;  %vm1672_vm9 = vcmp.eq.f32.partialorder %v1671_v54, 8.507059e+37 }
 0x144   :  { %v1663_v40 = vmul.f32 %v2991_v30, %v3278_v61  ;;  %2992 = vlog2.f32 %v1572_v36  ;;  %v1627_v8 = vadd.f32 -0.14207031, %v1626_v38  ;;  %vm1668_vm11 = vweird.f32 %v2991_v30 }
 0x145   :  { %v1587_v33 = vmul.f32 0.21714725, %v1577_v35  ;;  %2994 = vrcp.f32 %v3327_v45  ;;  %v1803_v53 = vadd.f32 -0.074975304, %v1802_v46  ;;  %vm1669_vm0 = vmor %vm1667_vm3, %vm1668_vm11  ;;  %v3359_v31 = vsel %vm1821_vm2, 3.1415927, %v3088_v2 }
 0x146   :  { %v1664_v47 = vsub.f32 1.0, %v1663_v40  ;;  %v1628_v59 = vmul.f32 %v1627_v8, %v3249_v20  ;;  %v1558_v56 = vmul.f32 %v3163_v58, %v3163_v58  ;;  %vm1765_vm11 = vcmp.ne.f32.partialorder %v3163_v58, %v3163_v58 }
 0x147   :  { %1593 = vst [vmem:[#allocation7 + $0x8] sm:$0xff] %v1587_v33  ;;  %v1804_v6 = vmul.f32 %v1803_v53, %v3286_v63  ;;  %vm1847_vm14 = vweird.f32 %v3327_v45 }
 0x148   :  { %v1665_v60 = vmul.f32 %v2991_v30, %v1664_v47  ;;  %v1629_v48 = vadd.f32 0.19993454, %v1628_v59 }
 0x149   :  { %v1805_v13 = vadd.f32 0.1064488, %v1804_v6  ;;  %v1853_v6 = vand.u32 2147483648, %v3327_v45 }
 0x14a   :  { %v1666_v49 = vadd.f32 %v2991_v30, %v1665_v60  ;;  %v2993_v11 = vpop.eup %2992  ;;  %v1630_v51 = vmul.f32 %v1629_v48, %v3249_v20 }
 0x14b   :  { %v2995_v22 = vpop.eup %2994  ;;  %v1583_v29 = vmul.f32 0.6931472, %v2993_v11  ;;  %v1806_v61 = vmul.f32 %v1805_v13, %v3286_v63  ;;  %v1509_v38 = vpop.f32.mrf.mxu0  ;;  %v1851_v11 = vand.u32 2147483647, %v3327_v45 }
 0x14c   :  { %v1670_v24 = vsel %vm1669_vm0, %v2991_v30, %v1666_v49  ;;  %v1843_v36 = vmul.f32 %v2995_v22, %v3327_v45  ;;  %v1523_v40 = vpop.f32.mrf.mxu1  ;;  %v1631_v46 = vadd.f32 -0.33333147, %v1630_v51  ;;  %v3368_v30 = vsel %vm1818_vm8, 2.3561945, %v3089_v4 }
 0x14d   :  { %v1675_v35 = vsel %vm1672_vm9, %v1674_v19, %v1670_v24  ;;  %v1590_v8 = vmul.f32 0.21714725, %v1583_v29  ;;  %v1524_v47 = vadd.f32 %v1523_v40, %v1509_v38  ;;  %v1807_v53 = vadd.f32 -0.14207031, %v1806_v61 }
 0x14e   :  { %v3363_v33 = vmul.f32 %v1675_v35, %v1660_v17  ;;  %v1844_v54 = vsub.f32 1.0, %v1843_v36  ;;  %v1632_v59 = vmul.f32 %v1631_v46, %v3249_v20  ;;  %vm1848_vm0 = vweird.f32 %v2995_v22 }
 0x14f   :  { %1596 = vst [vmem:[#allocation7 + $0x20] sm:$0xff] %v1590_v8  ;;  %v1808_v48 = vmul.f32 %v1807_v53, %v3286_v63  ;;  %v3381_v17 = vand.u32 2147483647, %v3163_v58  ;;  %vm1849_vm2 = vmor %vm1847_vm14, %vm1848_vm0  ;;  %v1854_v38 = vor.u32 1.1754944e-38, %v1853_v6  ;;  %v1840_v8 = vmin.f32 %v3312_v28, %v3309_v23 }
 0x150   :  { %v3375_v60 = vmul.f32 %v3363_v33, %v3363_v33  ;;  %v1845_v49 = vmul.f32 %v2995_v22, %v1844_v54  ;;  %v1633_v19 = vmul.f32 %v1632_v59, %v3242_v14  ;;  %vm1852_vm3 = vcmp.eq.f32.partialorder %v1851_v11, 8.507059e+37 }
 0x151   :  { %v1809_v24 = vadd.f32 0.19993454, %v1808_v48  ;;  %vm1635_vm9 = vcmp.gt.f32.partialorder %v3191_v25, %v3184_v21 }
 0x152   :  { %v1678_v20 = vmul.f32 0.002785687, %v3375_v60  ;;  %v1846_v29 = vadd.f32 %v2995_v22, %v1845_v49  ;;  %v1634_v35 = vadd.f32 %v1633_v19, %v3242_v14 }
 0x153   :  { %v1537_v13 = vpop.f32.mrf.mxu2  ;;  %v1810_v46 = vmul.f32 %v1809_v24, %v3286_v63 }
 0x154   :  { %v1538_v51 = vadd.f32 %v1537_v13, %v1524_v47  ;;  %v1551_v61 = vpop.f32.mrf.mxu3  ;;  %v1679_v36 = vadd.f32 -0.015866, %v1678_v20  ;;  %v1850_v47 = vsel %vm1849_vm2, %v2995_v22, %v1846_v29  ;;  %v1636_v53 = vsub.f32 1.5707964, %v1634_v35  ;;  %v1511_v29 = vpop.f32.mrf.mxu0 }
 0x155   :  { %v1855_v59 = vsel %vm1852_vm3, %v1854_v38, %v1850_v47  ;;  %v1811_v14 = vadd.f32 -0.33333147, %v1810_v46  ;;  %vm1771_vm2 = vcmp.eq.s32.totalorder %v3381_v17, inf  ;;  %vm1643_vm3 = vcmp.eq.f32.partialorder %v3179_v18, 0.0 }
 0x156   :  { %v3389_v40 = vadd.f32 %v1551_v61, %v1538_v51  ;;  %v1680_v54 = vmul.f32 %v1679_v36, %v3375_v60  ;;  %v3399_v6 = vmul.f32 %v1855_v59, %v1840_v8  ;;  %v1637_v49 = vsel %vm1635_vm9, %v1636_v53, %v1634_v35  ;;  %v1525_v61 = vpop.f32.mrf.mxu1 }
 0x157   :  { %v1639_v11 = vsub.f32 3.1415927, %v1637_v49  ;;  %v1812_v19 = vmul.f32 %v1811_v14, %v3286_v63  ;;  %v1561_v35 = vmul.f32 %v3165_v1, %v3165_v1  ;;  %v3441_v46 = vand.u32 2147483647, %v3165_v1 }
 0x158   :  { %v1564_v45 = vmul.f32 %v3389_v40, %v3389_v40  ;;  %v3402_v48 = vand.u32 2147483647, %v3389_v40  ;;  %v1681_v13 = vadd.f32 0.04247222, %v1680_v54  ;;  %vm1766_vm0 = vcmp.ne.f32.partialorder %v3389_v40, %v3389_v40 }
 0x159   :  { %v3409_v20 = vmul.f32 %v3399_v6, %v3399_v6  ;;  %vm3414_vm14 = vmor %vm1765_vm11, %vm1766_vm0  ;;  %v1813_v51 = vmul.f32 %v1812_v19, %v3272_v57  ;;  %v1656_v59 = vand.u32 2147483648, %v3179_v18  ;;  %v1526_v14 = vadd.f32 %v1525_v61, %v1511_v29 }
 0x15a   :  { %v1570_v22 = vadd.f32 %v1564_v45, %v1558_v56  ;;  %v1682_v25 = vmul.f32 %v1681_v13, %v3375_v60  ;;  %v3423_v63 = vmax.f32 %v3381_v17, %v3402_v48  ;;  %v1640_v56 = vsel %vm1638_vm6, %v1639_v11, %v1637_v49 }
 0x15b   :  { %v1858_v24 = vmul.f32 0.002785687, %v3409_v20  ;;  %vm1772_vm11 = vcmp.eq.s32.totalorder %v3402_v48, inf  ;;  %v1644_v36 = vsel %vm1643_vm3, %v3340_v15, %v1640_v56  ;;  %v1814_v47 = vadd.f32 %v1813_v51, %v3272_v57  ;;  %v1539_v54 = vpop.f32.mrf.mxu2 }
 0x15c   :  { %2996 = vlog2.f32 %v1570_v22  ;;  %v1683_v38 = vadd.f32 -0.074975304, %v1682_v25  ;;  %vm3436_vm9 = vmand %vm1771_vm2, %vm1772_vm11  ;;  %v1648_v8 = vsel %vm3195_vm4, nan, %v1644_v36  ;;  %vm1823_vm6 = vcmp.eq.f32.partialorder %v3209_v37, 0.0  ;;  %v1553_v56 = vpop.f32.mrf.mxu3 }
 0x15d   :  { %2998 = vrcp.f32 %v3423_v63  ;;  %v1859_v53 = vadd.f32 -0.015866, %v1858_v24  ;;  %v1654_v15 = vsel %vm3205_vm7, %v3345_v0, %v1648_v8  ;;  %v1816_v13 = vsub.f32 1.5707964, %v1814_v47 }
 0x15e   :  { %v1684_v45 = vmul.f32 %v1683_v38, %v3375_v60  ;;  %v1655_v49 = vand.u32 2147483647, %v1654_v15  ;;  %vm1815_vm4 = vcmp.gt.f32.partialorder %v3221_v41, %v3214_v39  ;;  %v1836_v57 = vand.u32 2147483648, %v3209_v37 }
 0x15f   :  { %v1860_v27 = vmul.f32 %v1859_v53, %v3409_v20  ;;  %v1540_v34 = vadd.f32 %v1539_v54, %v1526_v14  ;;  %vm1945_vm7 = vcmp.ne.f32.partialorder %v3165_v1, %v3165_v1  ;;  %v1817_v0 = vsel %vm1815_vm4, %v1816_v13, %v1814_v47 }
 0x160   :  { %v1685_v11 = vadd.f32 0.1064488, %v1684_v45  ;;  %v1657_v18 = vor.u32 %v1656_v59, %v1655_v49  ;;  %v1819_v24 = vsub.f32 3.1415927, %v1817_v0  ;;  %vm1727_vm0 = vweird.f32 %v3423_v63 }
 0x161   :  { %v1861_v19 = vadd.f32 0.04247222, %v1860_v27  ;;  %v3460_v61 = vadd.f32 %v1553_v56, %v1540_v34  ;;  %v1733_v53 = vand.u32 2147483648, %v3423_v63 }
 0x162   :  { %v2997_v22 = vpop.eup %2996  ;;  %v1686_v29 = vmul.f32 %v1685_v11, %v3375_v60  ;;  %v1958_v39 = vmul.f32 0.4342945, %v1657_v18  ;;  %v1820_v8 = vsel %vm1818_vm8, %v1819_v24, %v1817_v0 }
 0x163   :  { %v1579_v25 = vmul.f32 0.6931472, %v2997_v22  ;;  %v2999_v51 = vpop.eup %2998  ;;  %v1862_v41 = vmul.f32 %v1861_v19, %v3409_v20  ;;  %v1567_v54 = vmul.f32 %v3460_v61, %v3460_v61  ;;  %v1824_v15 = vsel %vm1823_vm6, %v3359_v31, %v1820_v8 }
 0x164   :  { %v1723_v38 = vmul.f32 %v2999_v51, %v3423_v63  ;;  %v1687_v47 = vadd.f32 -0.14207031, %v1686_v29  ;;  %1965 = vst [vmem:[#allocation7 + $0x30] sm:$0xff] %v1958_v39  ;;  %v3473_v14 = vand.u32 2147483647, %v3460_v61  ;;  %v1828_v32 = vsel %vm3225_vm10, nan, %v1824_v15 }
 0x165   :  { %v1588_v36 = vmul.f32 0.21714725, %v1579_v25  ;;  %v1863_v59 = vadd.f32 -0.074975304, %v1862_v41  ;;  %vm1728_vm8 = vweird.f32 %v2999_v51  ;;  %v1573_v13 = vadd.f32 %v1567_v54, %v1561_v35 }
 0x166   :  { %v1724_v45 = vsub.f32 1.0, %v1723_v38  ;;  %v1688_v49 = vmul.f32 %v1687_v47, %v3375_v60  ;;  %v1834_v27 = vsel %vm3233_vm13, %v3368_v30, %v1828_v32  ;;  %v1731_v22 = vand.u32 2147483647, %v3423_v63  ;;  %vm1729_vm10 = vmor %vm1727_vm0, %vm1728_vm8 }
 0x167   :  { %1594 = vst [vmem:[#allocation7 + $0x10] sm:$0xff] %v1588_v36  ;;  %v1864_v37 = vmul.f32 %v1863_v59, %v3409_v20  ;;  %v1835_v11 = vand.u32 2147483647, %v1834_v27  ;;  %3000 = vlog2.f32 %v1573_v13  ;;  %v1901_v43 = vmax.f32 %v3441_v46, %v3473_v14 }
 0x168   :  { %v1725_v31 = vmul.f32 %v2999_v51, %v1724_v45  ;;  %v1689_v34 = vadd.f32 0.19993454, %v1688_v49  ;;  %vm1946_vm2 = vcmp.ne.f32.partialorder %v3460_v61, %v3460_v61  ;;  %vm1951_vm13 = vcmp.eq.s32.totalorder %v3441_v46, inf }
 0x169   :  { %v1865_v18 = vadd.f32 0.1064488, %v1864_v37  ;;  %v1837_v55 = vor.u32 %v1836_v57, %v1835_v11  ;;  %v1734_v35 = vor.u32 1.1754944e-38, %v1733_v53  ;;  %3002 = vrcp.f32 %v1901_v43  ;;  %vm3494_vm3 = vmor %vm1945_vm7, %vm1946_vm2 }
 0x16a   :  { %v1726_v0 = vadd.f32 %v2999_v51, %v1725_v31  ;;  %v1690_v30 = vmul.f32 %v1689_v34, %v3375_v60  ;;  %v1720_v25 = vmin.f32 %v3381_v17, %v3402_v48  ;;  %vm1732_vm11 = vcmp.eq.f32.partialorder %v1731_v22, 8.507059e+37 }
 0x16b   :  { %v1866_v63 = vmul.f32 %v1865_v18, %v3409_v20  ;;  %v1961_v24 = vmul.f32 0.4342945, %v1837_v55  ;;  %vm1952_vm6 = vcmp.eq.s32.totalorder %v3473_v14, inf  ;;  %vm1701_vm7 = vcmp.lt.s32.totalorder %v3245_v50, 0 }
 0x16c   :  { %v1730_v56 = vsel %vm1729_vm10, %v2999_v51, %v1726_v0  ;;  %v1691_v57 = vadd.f32 -0.33333147, %v1690_v30  ;;  %vm3506_vm4 = vmand %vm1951_vm13, %vm1952_vm6  ;;  %vm1695_vm0 = vcmp.gt.f32.partialorder %v3267_v52, %v3259_v44  ;;  %v1911_v22 = vand.u32 2147483647, %v1901_v43 }
 0x16d   :  { %v1735_v29 = vsel %vm1732_vm11, %v1734_v35, %v1730_v56  ;;  %v1867_v39 = vadd.f32 -0.14207031, %v1866_v63  ;;  %v3001_v38 = vpop.eup %3000  ;;  %1968 = vst [vmem:[#allocation7 + $0x48] sm:$0xff] %v1961_v24  ;;  %v1913_v11 = vand.u32 2147483648, %v1901_v43  ;;  %vm1698_vm10 = vcmp.lt.f32.partialorder %v3245_v50, 0.0 }
 0x16e   :  { %v3502_v41 = vmul.f32 %v1735_v29, %v1720_v25  ;;  %v1692_v8 = vmul.f32 %v1691_v57, %v3375_v60  ;;  %v1585_v53 = vmul.f32 0.6931472, %v3001_v38  ;;  %vm1907_vm2 = vweird.f32 %v1901_v43 }
 0x16f   :  { %v1868_v51 = vmul.f32 %v1867_v39, %v3409_v20  ;;  %v3003_v54 = vpop.eup %3002  ;;  %vm1703_vm13 = vcmp.eq.f32.partialorder %v3256_v42, 0.0  ;;  %v1900_v44 = vmin.f32 %v3441_v46, %v3473_v14  ;;  %vm1912_vm6 = vcmp.eq.f32.partialorder %v1911_v22, 8.507059e+37 }
 0x170   :  { %v3514_v47 = vmul.f32 %v3502_v41, %v3502_v41  ;;  %v1693_v15 = vmul.f32 %v1692_v8, %v3363_v33  ;;  %v1591_v32 = vmul.f32 0.21714725, %v1585_v53  ;;  %v1903_v49 = vmul.f32 %v3003_v54, %v1901_v43 }
 0x171   :  { %v1869_v59 = vadd.f32 0.19993454, %v1868_v51  ;;  %vm1908_vm8 = vweird.f32 %v3003_v54  ;;  %v1914_v52 = vor.u32 1.1754944e-38, %v1913_v11 }
 0x172   :  { %v1738_v45 = vmul.f32 0.002785687, %v3514_v47  ;;  %v1694_v13 = vadd.f32 %v1693_v15, %v3363_v33  ;;  %1597 = vst [vmem:[#allocation7 + $0x28] sm:$0xff] %v1591_v32  ;;  %v1904_v37 = vsub.f32 1.0, %v1903_v49  ;;  %v1702_v33 = vsel %vm1701_vm7, 3.1415927, %v3088_v2  ;;  %vm1909_vm11 = vmor %vm1907_vm2, %vm1908_vm8 }
 0x173   :  { %v1870_v60 = vmul.f32 %v1869_v59, %v3409_v20  ;;  %v1716_v59 = vand.u32 2147483648, %v3256_v42  ;;  %vm1881_vm7 = vcmp.lt.s32.totalorder %v3296_v10, 0  ;;  %vm1758_vm8 = vcmp.lt.f32.partialorder %v3163_v58, 0.0 }
 0x174   :  { %v1739_v27 = vadd.f32 -0.015866, %v1738_v45  ;;  %v1696_v31 = vsub.f32 1.5707964, %v1694_v13  ;;  %v1905_v0 = vmul.f32 %v3003_v54, %v1904_v37  ;;  %v1882_v37 = vsel %vm1881_vm7, 3.1415927, %v3088_v2 }
 0x175   :  { %v1871_v34 = vadd.f32 -0.33333147, %v1870_v60  ;;  %vm1935_vm2 = vcmp.gt.f32.partialorder %v3473_v14, %v3441_v46 }
 0x176   :  { %v1740_v18 = vmul.f32 %v1739_v27, %v3514_v47  ;;  %v1697_v55 = vsel %vm1695_vm0, %v1696_v31, %v1694_v13  ;;  %v1906_v25 = vadd.f32 %v3003_v54, %v1905_v0  ;;  %vm1883_vm0 = vcmp.eq.f32.partialorder %v3300_v16, 0.0 }
 0x177   :  { %v1699_v30 = vsub.f32 3.1415927, %v1697_v55  ;;  %v1872_v35 = vmul.f32 %v1871_v34, %v3409_v20  ;;  %v1710_v20 = vsel %vm1698_vm10, 2.3561945, %v3089_v4 }
 0x178   :  { %v1741_v63 = vadd.f32 0.04247222, %v1740_v18  ;;  %v1910_v57 = vsel %vm1909_vm11, %v3003_v54, %v1906_v25 }
 0x179   :  { %v1700_v56 = vsel %vm1698_vm10, %v1699_v30, %v1697_v55  ;;  %v1873_v24 = vmul.f32 %v1872_v35, %v3399_v6  ;;  %v1915_v39 = vsel %vm1912_vm6, %v1914_v52, %v1910_v57  ;;  %v1896_v55 = vand.u32 2147483648, %v3300_v16 }
 0x17a   :  { %v1742_v43 = vmul.f32 %v1741_v63, %v3514_v47  ;;  %v1704_v29 = vsel %vm1703_vm13, %v1702_v33, %v1700_v56  ;;  %v3540_v53 = vmul.f32 %v1915_v39, %v1900_v44  ;;  %vm1763_vm10 = vcmp.eq.f32.partialorder %v3389_v40, 0.0 }
 0x17b   :  { %v1708_v38 = vsel %vm3280_vm12, nan, %v1704_v29  ;;  %v1874_v8 = vadd.f32 %v1873_v24, %v3399_v6  ;;  %vm1875_vm12 = vcmp.gt.f32.partialorder %v3309_v23, %v3312_v28 }
 0x17c   :  { %v1743_v51 = vadd.f32 -0.074975304, %v1742_v43  ;;  %v1714_v15 = vsel %vm3291_vm1, %v1710_v20, %v1708_v38  ;;  %v1917_v32 = vmul.f32 %v3540_v53, %v3540_v53  ;;  %vm1878_vm1 = vcmp.lt.f32.partialorder %v3296_v10, 0.0 }
 0x17d   :  { %v1715_v54 = vand.u32 2147483647, %v1714_v15  ;;  %v1876_v45 = vsub.f32 1.5707964, %v1874_v8  ;;  %v1890_v28 = vsel %vm1878_vm1, 2.3561945, %v3089_v4 }
 0x17e   :  { %v1744_v50 = vmul.f32 %v1743_v51, %v3514_v47  ;;  %v1918_v13 = vmul.f32 0.002785687, %v1917_v32 }
 0x17f   :  { %v1717_v62 = vor.u32 %v1716_v59, %v1715_v54  ;;  %v1877_v6 = vsel %vm1875_vm12, %v1876_v45, %v1874_v8  ;;  %v1770_v45 = vsel %vm1758_vm8, 2.3561945, %v3089_v4 }
 0x180   :  { %v1745_v49 = vadd.f32 0.1064488, %v1744_v50  ;;  %v1879_v7 = vsub.f32 3.1415927, %v1877_v6  ;;  %v1919_v27 = vadd.f32 -0.015866, %v1918_v13 }
 0x181   :  { %v1959_v42 = vmul.f32 0.4342945, %v1717_v62 }
 0x182   :  { %v1746_v60 = vmul.f32 %v1745_v49, %v3514_v47  ;;  %v1880_v31 = vsel %vm1878_vm1, %v1879_v7, %v1877_v6  ;;  %v1920_v23 = vmul.f32 %v1919_v27, %v1917_v32 }
 0x183   :  { %1966 = vst [vmem:[#allocation7 + $0x38] sm:$0xff] %v1959_v42  ;;  %v1884_v22 = vsel %vm1883_vm0, %v1882_v37, %v1880_v31 }
 0x184   :  { %v1747_v11 = vadd.f32 -0.14207031, %v1746_v60  ;;  %v1888_v34 = vsel %vm3318_vm5, nan, %v1884_v22  ;;  %v1921_v0 = vadd.f32 0.04247222, %v1920_v23  ;;  %vm1755_vm5 = vcmp.gt.f32.partialorder %v3402_v48, %v3381_v17 }
 0x185   :  { %v1894_v10 = vsel %vm3348_vm15, %v1890_v28, %v1888_v34  ;;  %vm1761_vm15 = vcmp.lt.s32.totalorder %v3163_v58, 0  ;;  %v1776_v58 = vand.u32 2147483648, %v3389_v40  ;;  %v1956_v60 = vand.u32 2147483648, %v3460_v61 }
 0x186   :  { %v1748_v18 = vmul.f32 %v1747_v11, %v3514_v47  ;;  %v1895_v33 = vand.u32 2147483647, %v1894_v10  ;;  %v1922_v35 = vmul.f32 %v1921_v0, %v1917_v32  ;;  %v1762_v15 = vsel %vm1761_vm15, 3.1415927, %v3088_v2 }
 0x188   :  { %v1749_v30 = vadd.f32 0.19993454, %v1748_v18  ;;  %v1897_v63 = vor.u32 %v1896_v55, %v1895_v33  ;;  %v1923_v44 = vadd.f32 -0.074975304, %v1922_v35 }
 0x18a   :  { %v1750_v25 = vmul.f32 %v1749_v30, %v3514_v47  ;;  %v1962_v52 = vmul.f32 0.4342945, %v1897_v63  ;;  %v1924_v24 = vmul.f32 %v1923_v44, %v1917_v32 }
 0x18c   :  { %v1751_v56 = vadd.f32 -0.33333147, %v1750_v25  ;;  %1969 = vst [vmem:[#allocation7 + $0x50] sm:$0xff] %v1962_v52  ;;  %v1925_v9 = vadd.f32 0.1064488, %v1924_v24 }
 0x18e   :  { %v1752_v26 = vmul.f32 %v1751_v56, %v3514_v47  ;;  %v1926_v57 = vmul.f32 %v1925_v9, %v1917_v32 }
 0x190   :  { %v1753_v43 = vmul.f32 %v1752_v26, %v3502_v41  ;;  %v1927_v29 = vadd.f32 -0.14207031, %v1926_v57 }
 0x192   :  { %v1754_v20 = vadd.f32 %v1753_v43, %v3502_v41  ;;  %v1928_v39 = vmul.f32 %v1927_v29, %v1917_v32 }
 0x194   :  { %v1756_v16 = vsub.f32 1.5707964, %v1754_v20  ;;  %v1929_v8 = vadd.f32 0.19993454, %v1928_v39 }
 0x196   :  { %v1757_v38 = vsel %vm1755_vm5, %v1756_v16, %v1754_v20  ;;  %v1930_v47 = vmul.f32 %v1929_v8, %v1917_v32 }
 0x197   :  { %v1759_v51 = vsub.f32 3.1415927, %v1757_v38 }
 0x198   :  { %v1931_v54 = vadd.f32 -0.33333147, %v1930_v47 }
 0x199   :  { %v1760_v59 = vsel %vm1758_vm8, %v1759_v51, %v1757_v38 }
 0x19a   :  { %v1764_v41 = vsel %vm1763_vm10, %v1762_v15, %v1760_v59  ;;  %v1932_v50 = vmul.f32 %v1931_v54, %v1917_v32 }
 0x19b   :  { %v1768_v17 = vsel %vm3414_vm14, nan, %v1764_v41  ;;  %vm3626_vm14 = vcmp.lt.f32.partialorder %v3165_v1, 0.0 }
 0x19c   :  { %v1774_v48 = vsel %vm3436_vm9, %v1770_v45, %v1768_v17  ;;  %v1933_v6 = vmul.f32 %v1932_v50, %v3540_v53  ;;  %vm1943_vm9 = vcmp.eq.f32.partialorder %v3460_v61, 0.0 }
 0x19d   :  { %v1775_v62 = vand.u32 2147483647, %v1774_v48 }
 0x19e   :  { %v1934_v49 = vadd.f32 %v1933_v6, %v3540_v53 }
 0x19f   :  { %v1777_v2 = vor.u32 %v1776_v58, %v1775_v62 }
 0x1a0   :  { %v1936_v7 = vsub.f32 1.5707964, %v1934_v49 }
 0x1a1   :  { %v1960_v13 = vmul.f32 0.4342945, %v1777_v2 }
 0x1a2   :  { %v1937_v4 = vsel %vm1935_vm2, %v1936_v7, %v1934_v49 }
 0x1a3   :  { %1967 = vst [vmem:[#allocation7 + $0x40] sm:$0xff] %v1960_v13  ;;  %v1939_v21 = vsub.f32 3.1415927, %v1937_v4 }
 0x1a5   :  { %v1940_v12 = vsel %vm3626_vm14, %v1939_v21, %v1937_v4 }
 0x1a6   :  { %v1944_v40 = vsel %vm1943_vm9, %v3170_v3, %v1940_v12 }
 0x1a7   :  { %v1948_v32 = vsel %vm3494_vm3, nan, %v1944_v40 }
 0x1a8   :  { %v1954_v53 = vsel %vm3506_vm4, %v3175_v5, %v1948_v32 }
 0x1a9   :  { %v1955_v42 = vand.u32 2147483647, %v1954_v53 }
 0x1ab   :  { %v1957_v1 = vor.u32 %v1956_v60, %v1955_v42 }
 0x1ad   :  { %v1963_v46 = vmul.f32 0.4342945, %v1957_v1 }
 0x1af   :  { %1970 = vst [vmem:[#allocation7 + $0x58] sm:$0xff] %v1963_v46 }
 0x1b0   :  { %1983 = dma.vmem_to_hbm [thread:$0]  %s1976_s1, 1536, %s1978_s25, [#allocation4], %s3086_s21, %s3086_s21, %s3087_s22  }
 0x1b1   :  { %3080 = dma.done.wait [#allocation4], 1536  }
 0x1b2   :  { %3081 = vsyncadd [#allocation4], 4294965760 }
 0x1b3   :  { %1988 = vsyncpa [#allocation3], 1 }
 0x1b4   :  { %1989 = vsyncpa [#allocation6], 1 }
 0x1b5   :  { %1990 = vsyncpa [#allocation4], 1 }

</bundles_post_ra>
